<compile_context>
chip_gen: v7x
topology: tpu7x:2x2x1
jax: 0.10.0
libtpu: 0.0.40
codegen_flags: <defaults>
</compile_context>

<pallas_src>
import functools
import math

import jax
import jax.numpy as jnp
from jax.experimental import pallas as pl
from jax.experimental.pallas import tpu as pltpu


def _layernorm(v, eps=1e-5):
    """Non-affine LayerNorm in f32 (gamma/beta are folded into the next matmul)."""
    mu = jnp.mean(v, axis=-1, keepdims=True)
    var = jnp.mean(jnp.square(v - mu), axis=-1, keepdims=True)
    return (v - mu) * jax.lax.rsqrt(var + eps)


def resblock_kernel(x_ref,                      # (1, S, D) bf16
                    wqkv_ref, bqkv_ref,         # (D, 3D) bf16, (1, 3D) f32  (LN1 + q-scale folded)
                    wo_ref, bo_ref,             # (H, hd, D) bf16, (1, D) f32
                    wfc_ref, bfc_ref,           # (D, 4D) bf16, (1, 4D) f32  (LN2 folded)
                    wpr_ref, bpr_ref,           # (4D, D) bf16, (1, D) f32
                    o_ref,                      # (1, tq, D) bf16
                    q_scr, k_scr, v_scr,        # head-major bf16 scratch (per batch element)
                    *, n_head, seq_len):
    qi = pl.program_id(1)
    tq = o_ref.shape[1]
    S = x_ref.shape[1]            # padded sequence length
    D = x_ref.shape[2]
    hd = D // n_head
    bf16 = jnp.bfloat16
    f32 = jnp.float32

    # ---- fused QKV over the full sequence, once per batch element ----------
    @pl.when(qi == 0)
    def _():
        xf = x_ref[0].astype(f32)                                    # (S, D)
        hf = _layernorm(xf).astype(bf16)
        qkv = jnp.dot(hf, wqkv_ref[...], preferred_element_type=f32) + bqkv_ref[...]
        q = qkv[:, :D]
        k = qkv[:, D:2 * D]
        v = qkv[:, 2 * D:]
        # One relayout per batch element (instead of per q tile):
        q_scr[...] = jnp.transpose(q.reshape(S, n_head, hd), (1, 0, 2)).astype(bf16)  # (H, S, hd)
        k_scr[...] = k.T.reshape(n_head, hd, S).astype(bf16)                          # (H, hd, S) = K^T
        v_scr[...] = jnp.transpose(v.reshape(S, n_head, hd), (1, 0, 2)).astype(bf16)  # (H, S, hd)

    # ---- query tile: x = x + attn(ln_1(x)) ----------------------------------
    row0 = pl.multiple_of(qi * tq, tq)
    x = x_ref[0, pl.ds(row0, tq), :].astype(f32)                     # (tq, D) residual

    qh = q_scr[:, pl.ds(row0, tq), :]                                # (H, tq, hd) bf16, pre-scaled
    s = jnp.einsum('hqd,hdk->hqk', qh, k_scr[...],
                   preferred_element_type=f32)                       # (H, tq, S), no rhs transpose
    if seq_len != S:                                                 # static: mask padded keys
        key_ok = jax.lax.broadcasted_iota(jnp.int32, (1, 1, S), 2) < seq_len
        s = jnp.where(key_ok, s, -1e30)
    s = s - jnp.max(s, axis=-1, keepdims=True)
    p = jnp.exp(s)
    # approx reciprocal (EUP slot); use approx=False for strict parity tests.
    p = p * pl.reciprocal(jnp.sum(p, axis=-1, keepdims=True), approx=True)
    ctx = jnp.einsum('hqk,hkd->hqd', p.astype(bf16), v_scr[...],
                     preferred_element_type=f32)                     # (H, tq, hd)

    # Output projection without the (H,tq,hd)->(tq,D) transpose:
    ctx_b = ctx.astype(bf16)
    acc = x + bo_ref[...]
    for h in range(n_head):
        acc = acc + jnp.dot(ctx_b[h], wo_ref[h], preferred_element_type=f32)
    x = acc                                                          # (tq, D) f32

    # ---- x = x + mlp(ln_2(x)) ------------------------------------------------
    hmid = _layernorm(x).astype(bf16)
    hmid = jnp.dot(hmid, wfc_ref[...], preferred_element_type=f32) + bfc_ref[...]   # (tq, 4D)
    hmid = hmid * jax.nn.sigmoid(1.702 * hmid)                                      # QuickGELU (f32)
    hmid = jnp.dot(hmid.astype(bf16), wpr_ref[...], preferred_element_type=f32) + bpr_ref[...]
    x = x + hmid

    o_ref[0] = x.astype(o_ref.dtype)


def _choose_tq(S_pad, n_head, D, budget_bytes=24 << 20):
    """Largest q tile (divisor of S_pad, multiple of 8) whose f32 temporaries
    (scores/probs + MLP intermediate + residual) fit the VMEM budget."""
    def temp_bytes(t):
        return 4 * (2 * n_head * t * S_pad + 10 * t * D)
    for t in range(min(S_pad, 512), 7, -1):
        if S_pad % t == 0 and t % 8 == 0 and temp_bytes(t) <= budget_bytes:
            return t
    return 8 if S_pad % 8 == 0 else S_pad


_SINGLE_BUFFER_WEIGHTS = True  # pipeline_mode=pl.Buffered(1) on constant-index specs


def run_resblock(x_bsd, layer, n_head, seq_len):
    """x_bsd: (B, S_pad, D) bf16. One ResidualAttentionBlock forward."""
    global _SINGLE_BUFFER_WEIGHTS
    B, S_pad, D = x_bsd.shape
    hd = D // n_head
    tq = _choose_tq(S_pad, n_head, D)
    assert S_pad % tq == 0
    n_qt = S_pad // tq

    def build(single_buffer):
        def const_spec(shape):
            n = len(shape)
            idx = lambda b, q, _n=n: (0,) * _n
            if single_buffer:
                # Constant index map -> double buffering never overlaps anything;
                # single-buffer to halve resident weight VMEM.
                return pl.BlockSpec(shape, idx, pipeline_mode=pl.Buffered(1))
            return pl.BlockSpec(shape, idx)

        in_specs = [pl.BlockSpec((1, S_pad, D), lambda b, q: (b, 0, 0))]
        for arr in layer:
            in_specs.append(const_spec(arr.shape))

        act = x_bsd.dtype.itemsize
        weight_bytes = sum(int(a.size) * a.dtype.itemsize for a in layer)
        vmem_est = ((1 if single_buffer else 2) * weight_bytes
                    + 4 * S_pad * D * act          # x block (double-buffered)
                    + 4 * tq * D * act             # out block (double-buffered)
                    + 6 * S_pad * D                # q/k/v bf16 scratch
                    + 8 * n_head * tq * S_pad      # f32 score + prob temporaries
                    + 12 * S_pad * D               # f32 qkv at qi == 0
                    + 32 * tq * D)                 # f32 MLP intermediates
        vmem_limit = int(min(max(int(vmem_est * 1.4), 32 << 20), 64 << 20))

        flops = int(B * (24 * S_pad * D * D + 4 * S_pad * S_pad * D))
        transcend = int(B * (n_head * S_pad * S_pad + 4 * S_pad * D))
        bytes_acc = int(2 * B * S_pad * D * act + weight_bytes)

        return pl.pallas_call(
            functools.partial(resblock_kernel, n_head=n_head, seq_len=seq_len),
            out_shape=jax.ShapeDtypeStruct((B, S_pad, D), x_bsd.dtype),
            grid=(B, n_qt),
            in_specs=in_specs,
            out_specs=pl.BlockSpec((1, tq, D), lambda b, q: (b, q, 0)),
            scratch_shapes=[pltpu.VMEM((n_head, S_pad, hd), jnp.bfloat16),   # q (H,S,hd)
                            pltpu.VMEM((n_head, hd, S_pad), jnp.bfloat16),   # k^T (H,hd,S)
                            pltpu.VMEM((n_head, S_pad, hd), jnp.bfloat16)],  # v (H,S,hd)
            compiler_params=pltpu.CompilerParams(
                dimension_semantics=("parallel", "arbitrary"),
                vmem_limit_bytes=vmem_limit),
            cost_estimate=pl.CostEstimate(flops=flops,
                                          transcendentals=transcend,
                                          bytes_accessed=bytes_acc),
        )

    if _SINGLE_BUFFER_WEIGHTS:
        try:
            return build(True)(x_bsd, *layer)
        except Exception:
            # Fallback for jax builds without BlockSpec.pipeline_mode support.
            _SINGLE_BUFFER_WEIGHTS = False
    return build(False)(x_bsd, *layer)


def prepare_layer_params(raw, n_head, weight_dtype=jnp.bfloat16):
    """Fold LN affines + attention scale into weights, pre-transpose, fuse QKV
    into one (D, 3D) matmul, reshape W_o^T into per-head slabs, cast to bf16."""
    (ln1_w, ln1_b, W_q, W_k, W_v, b_q, b_k, b_v, W_o, b_o,
     ln2_w, ln2_b, W_fc, b_fc, W_pr, b_pr) = raw
    D = W_q.shape[0]
    hd = D // n_head
    scale = 1.0 / math.sqrt(hd)

    def fold(gamma, beta, W, b):
        # LN_affine(x) @ W.T + b == LN_nonaffine(x) @ (gamma[:,None]*W.T) + (b + beta @ W.T)
        Wt = W.T
        return gamma[:, None] * Wt, b + beta @ Wt

    wq_t, bq = fold(ln1_w, ln1_b, W_q, b_q)
    wq_t, bq = wq_t * scale, bq * scale                   # fold 1/sqrt(hd) into q proj
    wk_t, bk = fold(ln1_w, ln1_b, W_k, b_k)
    wv_t, bv = fold(ln1_w, ln1_b, W_v, b_v)
    wqkv_t = jnp.concatenate([wq_t, wk_t, wv_t], axis=1)  # (D, 3D)
    bqkv = jnp.concatenate([bq, bk, bv])                  # (3D,)
    wfc_t, bfc = fold(ln2_w, ln2_b, W_fc, b_fc)           # (D, 4D), (4D,)
    wo_h = W_o.T.reshape(n_head, hd, D)                   # per-head (hd, D) slabs
    wpr_t = W_pr.T                                        # (4D, D)

    w = lambda a: a.astype(weight_dtype)
    r = lambda a: a.reshape(1, -1).astype(jnp.float32)
    return (w(wqkv_t), r(bqkv),
            w(wo_h), r(b_o),
            w(wfc_t), r(bfc),
            w(wpr_t), r(b_pr))


def transformer_forward(x_sbd, prepared_params, n_head):
    """x_sbd: (seq, batch, width) as in the PyTorch module."""
    S, B, D = x_sbd.shape
    orig_dtype = x_sbd.dtype
    # Carry activations in bf16 between layers (halves HBM traffic / x VMEM).
    x = jnp.transpose(x_sbd, (1, 0, 2)).astype(jnp.bfloat16)         # (B, S, D)
    S_pad = ((S + 7) // 8) * 8                                        # sublane-align; padded keys masked
    if S_pad != S:
        x = jnp.pad(x, ((0, 0), (0, S_pad - S), (0, 0)))
    for layer in prepared_params:
        x = run_resblock(x, layer, n_head, seq_len=S)
    x = x[:, :S, :]
    return jnp.transpose(x, (1, 0, 2)).astype(orig_dtype)            # back to (seq, batch, width)


def init_params(key, width, layers):
    """Deterministic synthetic parameters matching ResidualAttentionBlock shapes
    (PyTorch conventions: Linear weights are (out, in), biases 1-D)."""
    D = width
    params = []
    for _ in range(layers):
        key, *ks = jax.random.split(key, 11)
        std = 0.02
        layer = (
            1.0 + 0.1 * jax.random.normal(ks[0], (D,), jnp.float32),    # ln1 weight
            0.01 * jax.random.normal(ks[1], (D,), jnp.float32),         # ln1 bias
            std * jax.random.normal(ks[2], (D, D), jnp.float32),        # W_q
            std * jax.random.normal(ks[3], (D, D), jnp.float32),        # W_k
            std * jax.random.normal(ks[4], (D, D), jnp.float32),        # W_v
            jnp.zeros((D,), jnp.float32),                               # b_q
            jnp.zeros((D,), jnp.float32),                               # b_k
            jnp.zeros((D,), jnp.float32),                               # b_v
            std * jax.random.normal(ks[5], (D, D), jnp.float32),        # out_proj W
            jnp.zeros((D,), jnp.float32),                               # out_proj b
            1.0 + 0.1 * jax.random.normal(ks[6], (D,), jnp.float32),    # ln2 weight
            0.01 * jax.random.normal(ks[7], (D,), jnp.float32),         # ln2 bias
            std * jax.random.normal(ks[8], (4 * D, D), jnp.float32),    # c_fc W
            jnp.zeros((4 * D,), jnp.float32),                           # c_fc b
            std * jax.random.normal(ks[9], (D, 4 * D), jnp.float32),    # c_proj W
            jnp.zeros((D,), jnp.float32),                               # c_proj b
        )
        params.append(layer)
    return params


if __name__ == "__main__":
    width, layers, heads = 32, 2, 4
    seq, batch = 8, 2
    assert width % heads == 0

    key = jax.random.PRNGKey(0)
    k_x, k_p = jax.random.split(key)
    x = jax.random.normal(k_x, (seq, batch, width), jnp.float32)

    raw_params = init_params(k_p, width, layers)
    params = [prepare_layer_params(p, heads) for p in raw_params]

    out = transformer_forward(x, params, heads)
    out = jax.block_until_ready(out)
    assert out.shape == (seq, batch, width)
    print("KERNEL_OK")
</pallas_src>

<mosaic_0001>
module attributes {stable_mosaic.version = 11 : i64} {
  func.func @resblock_kernel(%arg0: i32, %arg1: i32, %arg2: memref<1x8x32xbf16, #tpu.memory_space<vmem>>, %arg3: memref<32x96xbf16, #tpu.memory_space<vmem>>, %arg4: memref<1x96xf32, #tpu.memory_space<vmem>>, %arg5: memref<4x8x32xbf16, #tpu.memory_space<vmem>>, %arg6: memref<1x32xf32, #tpu.memory_space<vmem>>, %arg7: memref<32x128xbf16, #tpu.memory_space<vmem>>, %arg8: memref<1x128xf32, #tpu.memory_space<vmem>>, %arg9: memref<128x32xbf16, #tpu.memory_space<vmem>>, %arg10: memref<1x32xf32, #tpu.memory_space<vmem>>, %arg11: memref<1x8x32xbf16, #tpu.memory_space<vmem>>, %arg12: memref<4x8x8xbf16, #tpu.memory_space<vmem>>, %arg13: memref<4x8x8xbf16, #tpu.memory_space<vmem>>, %arg14: memref<4x8x8xbf16, #tpu.memory_space<vmem>>) attributes {dimension_semantics = [#tpu.dimension_semantics<parallel>, #tpu.dimension_semantics<arbitrary>], iteration_bounds = array<i64: 2, 1>, scalar_prefetch = 0 : i64, scratch_operands = 3 : i64, tpu.core_type = #tpu.core_type<tc>, window_params = [{transform_indices = @transform_0, window_bounds = array<i64: 1, 8, 32>}, {pipeline_mode = #tpu.pipeline_mode<synchronous>, transform_indices = @transform_1, window_bounds = array<i64: 32, 96>}, {pipeline_mode = #tpu.pipeline_mode<synchronous>, transform_indices = @transform_2, window_bounds = array<i64: 1, 96>}, {pipeline_mode = #tpu.pipeline_mode<synchronous>, transform_indices = @transform_3, window_bounds = array<i64: 4, 8, 32>}, {pipeline_mode = #tpu.pipeline_mode<synchronous>, transform_indices = @transform_4, window_bounds = array<i64: 1, 32>}, {pipeline_mode = #tpu.pipeline_mode<synchronous>, transform_indices = @transform_5, window_bounds = array<i64: 32, 128>}, {pipeline_mode = #tpu.pipeline_mode<synchronous>, transform_indices = @transform_6, window_bounds = array<i64: 1, 128>}, {pipeline_mode = #tpu.pipeline_mode<synchronous>, transform_indices = @transform_7, window_bounds = array<i64: 128, 32>}, {pipeline_mode = #tpu.pipeline_mode<synchronous>, transform_indices = @transform_8, window_bounds = array<i64: 1, 32>}, {transform_indices = @transform_9, window_bounds = array<i64: 1, 8, 32>}]} {
    %c0_i32 = arith.constant 0 : i32
    %0 = arith.cmpi eq, %arg1, %c0_i32 : i32
    %1 = arith.extui %0 : i1 to i32
    %c0_i32_0 = arith.constant 0 : i32
    %2 = arith.cmpi ne, %1, %c0_i32_0 : i32
    scf.if %2 {
      %c0_48 = arith.constant 0 : index
      %c0_49 = arith.constant 0 : index
      %c0_50 = arith.constant 0 : index
      %97 = vector.load %arg2[%c0_48, %c0_49, %c0_50] : memref<1x8x32xbf16, #tpu.memory_space<vmem>>, vector<1x8x32xbf16>
      %98 = vector.shape_cast %97 : vector<1x8x32xbf16> to vector<8x32xbf16>
      %99 = arith.extf %98 : vector<8x32xbf16> to vector<8x32xf32>
      %cst_51 = arith.constant dense<0.000000e+00> : vector<8xf32>
      %100 = vector.multi_reduction <add>, %99, %cst_51 [1] : vector<8x32xf32> to vector<8xf32>
      %101 = vector.shape_cast %100 : vector<8xf32> to vector<8x1xf32>
      %cst_52 = arith.constant 3.200000e+01 : f32
      %102 = vector.broadcast %cst_52 : f32 to vector<8x1xf32>
      %103 = arith.divf %101, %102 : vector<8x1xf32>
      %104 = vector.broadcast %103 : vector<8x1xf32> to vector<8x32xf32>
      %105 = arith.subf %99, %104 : vector<8x32xf32>
      %106 = arith.mulf %105, %105 : vector<8x32xf32>
      %cst_53 = arith.constant dense<0.000000e+00> : vector<8xf32>
      %107 = vector.multi_reduction <add>, %106, %cst_53 [1] : vector<8x32xf32> to vector<8xf32>
      %108 = vector.shape_cast %107 : vector<8xf32> to vector<8x1xf32>
      %cst_54 = arith.constant 3.200000e+01 : f32
      %109 = vector.broadcast %cst_54 : f32 to vector<8x1xf32>
      %110 = arith.divf %108, %109 : vector<8x1xf32>
      %111 = vector.broadcast %103 : vector<8x1xf32> to vector<8x32xf32>
      %112 = arith.subf %99, %111 : vector<8x32xf32>
      %cst_55 = arith.constant 9.99999974E-6 : f32
      %113 = vector.broadcast %cst_55 : f32 to vector<8x1xf32>
      %114 = arith.addf %110, %113 : vector<8x1xf32>
      %115 = math.rsqrt %114 : vector<8x1xf32>
      %116 = vector.broadcast %115 : vector<8x1xf32> to vector<8x32xf32>
      %117 = arith.mulf %112, %116 : vector<8x32xf32>
      %118 = arith.truncf %117 : vector<8x32xf32> to vector<8x32xbf16>
      %c0_56 = arith.constant 0 : index
      %c0_57 = arith.constant 0 : index
      %119 = vector.load %arg3[%c0_56, %c0_57] : memref<32x96xbf16, #tpu.memory_space<vmem>>, vector<32x96xbf16>
      %cst_58 = arith.constant dense<0.000000e+00> : vector<8x96xf32>
      %120 = tpu.matmul %118, %119, %cst_58 {dimension_numbers = #tpu.dot_dimension_numbers<[1], [0], [0], [1], [0, 0, 1, 1], [], []>} : vector<8x32xbf16>, vector<32x96xbf16>, vector<8x96xf32> -> vector<8x96xf32>
      %c0_59 = arith.constant 0 : index
      %c0_60 = arith.constant 0 : index
      %121 = vector.load %arg4[%c0_59, %c0_60] : memref<1x96xf32, #tpu.memory_space<vmem>>, vector<1x96xf32>
      %122 = vector.broadcast %121 : vector<1x96xf32> to vector<8x96xf32>
      %123 = arith.addf %120, %122 : vector<8x96xf32>
      %124 = vector.extract_strided_slice %123 {offsets = [0, 0], sizes = [8, 32], strides = [1, 1]} : vector<8x96xf32> to vector<8x32xf32>
      %125 = vector.extract_strided_slice %123 {offsets = [0, 32], sizes = [8, 32], strides = [1, 1]} : vector<8x96xf32> to vector<8x32xf32>
      %126 = vector.extract_strided_slice %123 {offsets = [0, 64], sizes = [8, 32], strides = [1, 1]} : vector<8x96xf32> to vector<8x32xf32>
      %127 = vector.shape_cast %124 : vector<8x32xf32> to vector<8x4x8xf32>
      %128 = tpu.transpose %127, [1, 0, 2] : vector<8x4x8xf32> -> vector<4x8x8xf32>
      %129 = arith.truncf %128 : vector<4x8x8xf32> to vector<4x8x8xbf16>
      %c0_61 = arith.constant 0 : index
      %c0_62 = arith.constant 0 : index
      %c0_63 = arith.constant 0 : index
      %130 = vector.load %arg12[%c0_61, %c0_62, %c0_63] : memref<4x8x8xbf16, #tpu.memory_space<vmem>>, vector<4x8x8xbf16>
      tpu.vector_store %arg12[%c0_61, %c0_62, %c0_63], %129 {strides = array<i32>} : memref<4x8x8xbf16, #tpu.memory_space<vmem>>, vector<4x8x8xbf16>,
      %131 = tpu.transpose %125, [1, 0] : vector<8x32xf32> -> vector<32x8xf32>
      %132 = vector.shape_cast %131 : vector<32x8xf32> to vector<4x8x8xf32>
      %133 = arith.truncf %132 : vector<4x8x8xf32> to vector<4x8x8xbf16>
      %c0_64 = arith.constant 0 : index
      %c0_65 = arith.constant 0 : index
      %c0_66 = arith.constant 0 : index
      %134 = vector.load %arg13[%c0_64, %c0_65, %c0_66] : memref<4x8x8xbf16, #tpu.memory_space<vmem>>, vector<4x8x8xbf16>
      tpu.vector_store %arg13[%c0_64, %c0_65, %c0_66], %133 {strides = array<i32>} : memref<4x8x8xbf16, #tpu.memory_space<vmem>>, vector<4x8x8xbf16>,
      %135 = vector.shape_cast %126 : vector<8x32xf32> to vector<8x4x8xf32>
      %136 = tpu.transpose %135, [1, 0, 2] : vector<8x4x8xf32> -> vector<4x8x8xf32>
      %137 = arith.truncf %136 : vector<4x8x8xf32> to vector<4x8x8xbf16>
      %c0_67 = arith.constant 0 : index
      %c0_68 = arith.constant 0 : index
      %c0_69 = arith.constant 0 : index
      %138 = vector.load %arg14[%c0_67, %c0_68, %c0_69] : memref<4x8x8xbf16, #tpu.memory_space<vmem>>, vector<4x8x8xbf16>
      tpu.vector_store %arg14[%c0_67, %c0_68, %c0_69], %137 {strides = array<i32>} : memref<4x8x8xbf16, #tpu.memory_space<vmem>>, vector<4x8x8xbf16>,
    } else {
    }
    %c8_i32 = arith.constant 8 : i32
    %3 = arith.muli %arg1, %c8_i32 : i32
    %4 = tpu.assume_multiple %3, 8 : i32
    %c0 = arith.constant 0 : index
    %5 = arith.index_cast %4 : i32 to index
    %c0_1 = arith.constant 0 : index
    %6 = vector.load %arg2[%c0, %5, %c0_1] : memref<1x8x32xbf16, #tpu.memory_space<vmem>>, vector<1x8x32xbf16>
    %7 = vector.shape_cast %6 : vector<1x8x32xbf16> to vector<8x32xbf16>
    %8 = arith.extf %7 : vector<8x32xbf16> to vector<8x32xf32>
    %c0_2 = arith.constant 0 : index
    %9 = arith.index_cast %4 : i32 to index
    %c0_3 = arith.constant 0 : index
    %10 = vector.load %arg12[%c0_2, %9, %c0_3] : memref<4x8x8xbf16, #tpu.memory_space<vmem>>, vector<4x8x8xbf16>
    %c0_4 = arith.constant 0 : index
    %c0_5 = arith.constant 0 : index
    %c0_6 = arith.constant 0 : index
    %11 = vector.load %arg13[%c0_4, %c0_5, %c0_6] : memref<4x8x8xbf16, #tpu.memory_space<vmem>>, vector<4x8x8xbf16>
    "tpu.trace_start"() <{level = 10 : i32, message = "hqd,hdk->hqk"}> : () -> ()
    %cst = arith.constant dense<0.000000e+00> : vector<4x8x8xf32>
    %12 = tpu.matmul %10, %11, %cst {dimension_numbers = #tpu.dot_dimension_numbers<[2], [1], [1], [2], [0, 0, 0, 1, 1, 2], [0], [0]>} : vector<4x8x8xbf16>, vector<4x8x8xbf16>, vector<4x8x8xf32> -> vector<4x8x8xf32>
    "tpu.trace_stop"() : () -> ()
    %cst_7 = arith.constant dense<0xFF800000> : vector<4x8xf32>
    %13 = vector.multi_reduction <maximumf>, %12, %cst_7 [2] : vector<4x8x8xf32> to vector<4x8xf32>
    %14 = vector.shape_cast %13 : vector<4x8xf32> to vector<4x8x1xf32>
    %15 = vector.broadcast %14 : vector<4x8x1xf32> to vector<4x8x8xf32>
    %16 = arith.subf %12, %15 : vector<4x8x8xf32>
    %17 = math.exp %16 : vector<4x8x8xf32>
    %cst_8 = arith.constant dense<0.000000e+00> : vector<4x8xf32>
    %18 = vector.multi_reduction <add>, %17, %cst_8 [2] : vector<4x8x8xf32> to vector<4x8xf32>
    %19 = vector.shape_cast %18 : vector<4x8xf32> to vector<4x8x1xf32>
    %20 = tpu.reciprocal %19 {approx = true} : vector<4x8x1xf32> -> vector<4x8x1xf32>
    %21 = vector.broadcast %20 : vector<4x8x1xf32> to vector<4x8x8xf32>
    %22 = arith.mulf %17, %21 : vector<4x8x8xf32>
    %23 = arith.truncf %22 : vector<4x8x8xf32> to vector<4x8x8xbf16>
    %c0_9 = arith.constant 0 : index
    %c0_10 = arith.constant 0 : index
    %c0_11 = arith.constant 0 : index
    %24 = vector.load %arg14[%c0_9, %c0_10, %c0_11] : memref<4x8x8xbf16, #tpu.memory_space<vmem>>, vector<4x8x8xbf16>
    "tpu.trace_start"() <{level = 10 : i32, message = "hqk,hkd->hqd"}> : () -> ()
    %cst_12 = arith.constant dense<0.000000e+00> : vector<4x8x8xf32>
    %25 = tpu.matmul %23, %24, %cst_12 {dimension_numbers = #tpu.dot_dimension_numbers<[2], [1], [1], [2], [0, 0, 0, 1, 1, 2], [0], [0]>} : vector<4x8x8xbf16>, vector<4x8x8xbf16>, vector<4x8x8xf32> -> vector<4x8x8xf32>
    "tpu.trace_stop"() : () -> ()
    %26 = arith.truncf %25 : vector<4x8x8xf32> to vector<4x8x8xbf16>
    %c0_13 = arith.constant 0 : index
    %c0_14 = arith.constant 0 : index
    %27 = vector.load %arg6[%c0_13, %c0_14] : memref<1x32xf32, #tpu.memory_space<vmem>>, vector<1x32xf32>
    %28 = vector.broadcast %27 : vector<1x32xf32> to vector<8x32xf32>
    %29 = arith.addf %8, %28 : vector<8x32xf32>
    %30 = vector.extract_strided_slice %26 {offsets = [0, 0, 0], sizes = [1, 8, 8], strides = [1, 1, 1]} : vector<4x8x8xbf16> to vector<1x8x8xbf16>
    %31 = vector.shape_cast %30 : vector<1x8x8xbf16> to vector<8x8xbf16>
    %c0_15 = arith.constant 0 : index
    %c0_16 = arith.constant 0 : index
    %c0_17 = arith.constant 0 : index
    %32 = vector.load %arg5[%c0_15, %c0_16, %c0_17] : memref<4x8x32xbf16, #tpu.memory_space<vmem>>, vector<1x8x32xbf16>
    %33 = vector.shape_cast %32 : vector<1x8x32xbf16> to vector<8x32xbf16>
    %cst_18 = arith.constant dense<0.000000e+00> : vector<8x32xf32>
    %34 = tpu.matmul %31, %33, %cst_18 {dimension_numbers = #tpu.dot_dimension_numbers<[1], [0], [0], [1], [0, 0, 1, 1], [], []>} : vector<8x8xbf16>, vector<8x32xbf16>, vector<8x32xf32> -> vector<8x32xf32>
    %35 = arith.addf %29, %34 : vector<8x32xf32>
    %36 = vector.extract_strided_slice %26 {offsets = [1, 0, 0], sizes = [1, 8, 8], strides = [1, 1, 1]} : vector<4x8x8xbf16> to vector<1x8x8xbf16>
    %37 = vector.shape_cast %36 : vector<1x8x8xbf16> to vector<8x8xbf16>
    %c1 = arith.constant 1 : index
    %c0_19 = arith.constant 0 : index
    %c0_20 = arith.constant 0 : index
    %38 = vector.load %arg5[%c1, %c0_19, %c0_20] : memref<4x8x32xbf16, #tpu.memory_space<vmem>>, vector<1x8x32xbf16>
    %39 = vector.shape_cast %38 : vector<1x8x32xbf16> to vector<8x32xbf16>
    %cst_21 = arith.constant dense<0.000000e+00> : vector<8x32xf32>
    %40 = tpu.matmul %37, %39, %cst_21 {dimension_numbers = #tpu.dot_dimension_numbers<[1], [0], [0], [1], [0, 0, 1, 1], [], []>} : vector<8x8xbf16>, vector<8x32xbf16>, vector<8x32xf32> -> vector<8x32xf32>
    %41 = arith.addf %35, %40 : vector<8x32xf32>
    %42 = vector.extract_strided_slice %26 {offsets = [2, 0, 0], sizes = [1, 8, 8], strides = [1, 1, 1]} : vector<4x8x8xbf16> to vector<1x8x8xbf16>
    %43 = vector.shape_cast %42 : vector<1x8x8xbf16> to vector<8x8xbf16>
    %c2 = arith.constant 2 : index
    %c0_22 = arith.constant 0 : index
    %c0_23 = arith.constant 0 : index
    %44 = vector.load %arg5[%c2, %c0_22, %c0_23] : memref<4x8x32xbf16, #tpu.memory_space<vmem>>, vector<1x8x32xbf16>
    %45 = vector.shape_cast %44 : vector<1x8x32xbf16> to vector<8x32xbf16>
    %cst_24 = arith.constant dense<0.000000e+00> : vector<8x32xf32>
    %46 = tpu.matmul %43, %45, %cst_24 {dimension_numbers = #tpu.dot_dimension_numbers<[1], [0], [0], [1], [0, 0, 1, 1], [], []>} : vector<8x8xbf16>, vector<8x32xbf16>, vector<8x32xf32> -> vector<8x32xf32>
    %47 = arith.addf %41, %46 : vector<8x32xf32>
    %48 = vector.extract_strided_slice %26 {offsets = [3, 0, 0], sizes = [1, 8, 8], strides = [1, 1, 1]} : vector<4x8x8xbf16> to vector<1x8x8xbf16>
    %49 = vector.shape_cast %48 : vector<1x8x8xbf16> to vector<8x8xbf16>
    %c3 = arith.constant 3 : index
    %c0_25 = arith.constant 0 : index
    %c0_26 = arith.constant 0 : index
    %50 = vector.load %arg5[%c3, %c0_25, %c0_26] : memref<4x8x32xbf16, #tpu.memory_space<vmem>>, vector<1x8x32xbf16>
    %51 = vector.shape_cast %50 : vector<1x8x32xbf16> to vector<8x32xbf16>
    %cst_27 = arith.constant dense<0.000000e+00> : vector<8x32xf32>
    %52 = tpu.matmul %49, %51, %cst_27 {dimension_numbers = #tpu.dot_dimension_numbers<[1], [0], [0], [1], [0, 0, 1, 1], [], []>} : vector<8x8xbf16>, vector<8x32xbf16>, vector<8x32xf32> -> vector<8x32xf32>
    %53 = arith.addf %47, %52 : vector<8x32xf32>
    %cst_28 = arith.constant dense<0.000000e+00> : vector<8xf32>
    %54 = vector.multi_reduction <add>, %53, %cst_28 [1] : vector<8x32xf32> to vector<8xf32>
    %55 = vector.shape_cast %54 : vector<8xf32> to vector<8x1xf32>
    %cst_29 = arith.constant 3.200000e+01 : f32
    %56 = vector.broadcast %cst_29 : f32 to vector<8x1xf32>
    %57 = arith.divf %55, %56 : vector<8x1xf32>
    %58 = vector.broadcast %57 : vector<8x1xf32> to vector<8x32xf32>
    %59 = arith.subf %53, %58 : vector<8x32xf32>
    %60 = arith.mulf %59, %59 : vector<8x32xf32>
    %cst_30 = arith.constant dense<0.000000e+00> : vector<8xf32>
    %61 = vector.multi_reduction <add>, %60, %cst_30 [1] : vector<8x32xf32> to vector<8xf32>
    %62 = vector.shape_cast %61 : vector<8xf32> to vector<8x1xf32>
    %cst_31 = arith.constant 3.200000e+01 : f32
    %63 = vector.broadcast %cst_31 : f32 to vector<8x1xf32>
    %64 = arith.divf %62, %63 : vector<8x1xf32>
    %65 = vector.broadcast %57 : vector<8x1xf32> to vector<8x32xf32>
    %66 = arith.subf %53, %65 : vector<8x32xf32>
    %cst_32 = arith.constant 9.99999974E-6 : f32
    %67 = vector.broadcast %cst_32 : f32 to vector<8x1xf32>
    %68 = arith.addf %64, %67 : vector<8x1xf32>
    %69 = math.rsqrt %68 : vector<8x1xf32>
    %70 = vector.broadcast %69 : vector<8x1xf32> to vector<8x32xf32>
    %71 = arith.mulf %66, %70 : vector<8x32xf32>
    %72 = arith.truncf %71 : vector<8x32xf32> to vector<8x32xbf16>
    %c0_33 = arith.constant 0 : index
    %c0_34 = arith.constant 0 : index
    %73 = vector.load %arg7[%c0_33, %c0_34] : memref<32x128xbf16, #tpu.memory_space<vmem>>, vector<32x128xbf16>
    %cst_35 = arith.constant dense<0.000000e+00> : vector<8x128xf32>
    %74 = tpu.matmul %72, %73, %cst_35 {dimension_numbers = #tpu.dot_dimension_numbers<[1], [0], [0], [1], [0, 0, 1, 1], [], []>} : vector<8x32xbf16>, vector<32x128xbf16>, vector<8x128xf32> -> vector<8x128xf32>
    %c0_36 = arith.constant 0 : index
    %c0_37 = arith.constant 0 : index
    %75 = vector.load %arg8[%c0_36, %c0_37] : memref<1x128xf32, #tpu.memory_space<vmem>>, vector<1x128xf32>
    %76 = vector.broadcast %75 : vector<1x128xf32> to vector<8x128xf32>
    %77 = arith.addf %74, %76 : vector<8x128xf32>
    %cst_38 = arith.constant 1.702000e+00 : f32
    %78 = vector.broadcast %cst_38 : f32 to vector<8x128xf32>
    %79 = arith.mulf %78, %77 : vector<8x128xf32>
    %80 = arith.negf %79 : vector<8x128xf32>
    %81 = math.exp %80 : vector<8x128xf32>
    %cst_39 = arith.constant 1.000000e+00 : f32
    %82 = vector.broadcast %cst_39 : f32 to vector<8x128xf32>
    %83 = arith.addf %82, %81 : vector<8x128xf32>
    %84 = arith.divf %82, %83 : vector<8x128xf32>
    %85 = arith.mulf %77, %84 : vector<8x128xf32>
    %86 = arith.truncf %85 : vector<8x128xf32> to vector<8x128xbf16>
    %c0_40 = arith.constant 0 : index
    %c0_41 = arith.constant 0 : index
    %87 = vector.load %arg9[%c0_40, %c0_41] : memref<128x32xbf16, #tpu.memory_space<vmem>>, vector<128x32xbf16>
    %cst_42 = arith.constant dense<0.000000e+00> : vector<8x32xf32>
    %88 = tpu.matmul %86, %87, %cst_42 {dimension_numbers = #tpu.dot_dimension_numbers<[1], [0], [0], [1], [0, 0, 1, 1], [], []>} : vector<8x128xbf16>, vector<128x32xbf16>, vector<8x32xf32> -> vector<8x32xf32>
    %c0_43 = arith.constant 0 : index
    %c0_44 = arith.constant 0 : index
    %89 = vector.load %arg10[%c0_43, %c0_44] : memref<1x32xf32, #tpu.memory_space<vmem>>, vector<1x32xf32>
    %90 = vector.broadcast %89 : vector<1x32xf32> to vector<8x32xf32>
    %91 = arith.addf %88, %90 : vector<8x32xf32>
    %92 = arith.addf %53, %91 : vector<8x32xf32>
    %93 = arith.truncf %92 : vector<8x32xf32> to vector<8x32xbf16>
    %c0_45 = arith.constant 0 : index
    %c0_46 = arith.constant 0 : index
    %c0_47 = arith.constant 0 : index
    %94 = vector.load %arg11[%c0_45, %c0_46, %c0_47] : memref<1x8x32xbf16, #tpu.memory_space<vmem>>, vector<1x8x32xbf16>
    %95 = vector.shape_cast %94 : vector<1x8x32xbf16> to vector<8x32xbf16>
    %96 = vector.shape_cast %93 : vector<8x32xbf16> to vector<1x8x32xbf16>
    tpu.vector_store %arg11[%c0_45, %c0_46, %c0_47], %96 {strides = array<i32>} : memref<1x8x32xbf16, #tpu.memory_space<vmem>>, vector<1x8x32xbf16>,
    return
  }
  func.func @transform_0(%arg0: i32, %arg1: i32) -> (i32, i32, i32) {
    %c0_i32 = arith.constant 0 : i32
    %c0_i32_0 = arith.constant 0 : i32
    %c0_i32_1 = arith.constant 0 : i32
    return %arg0, %c0_i32, %c0_i32_0 : i32, i32, i32
  }
  func.func @transform_1(%arg0: i32, %arg1: i32) -> (i32, i32) {
    %c0_i32 = arith.constant 0 : i32
    %c0_i32_0 = arith.constant 0 : i32
    %c0_i32_1 = arith.constant 0 : i32
    return %c0_i32, %c0_i32_0 : i32, i32
  }
  func.func @transform_2(%arg0: i32, %arg1: i32) -> (i32, i32) {
    %c0_i32 = arith.constant 0 : i32
    %c0_i32_0 = arith.constant 0 : i32
    %c0_i32_1 = arith.constant 0 : i32
    return %c0_i32, %c0_i32_0 : i32, i32
  }
  func.func @transform_3(%arg0: i32, %arg1: i32) -> (i32, i32, i32) {
    %c0_i32 = arith.constant 0 : i32
    %c0_i32_0 = arith.constant 0 : i32
    %c0_i32_1 = arith.constant 0 : i32
    %c0_i32_2 = arith.constant 0 : i32
    return %c0_i32, %c0_i32_0, %c0_i32_1 : i32, i32, i32
  }
  func.func @transform_4(%arg0: i32, %arg1: i32) -> (i32, i32) {
    %c0_i32 = arith.constant 0 : i32
    %c0_i32_0 = arith.constant 0 : i32
    %c0_i32_1 = arith.constant 0 : i32
    return %c0_i32, %c0_i32_0 : i32, i32
  }
  func.func @transform_5(%arg0: i32, %arg1: i32) -> (i32, i32) {
    %c0_i32 = arith.constant 0 : i32
    %c0_i32_0 = arith.constant 0 : i32
    %c0_i32_1 = arith.constant 0 : i32
    return %c0_i32, %c0_i32_0 : i32, i32
  }
  func.func @transform_6(%arg0: i32, %arg1: i32) -> (i32, i32) {
    %c0_i32 = arith.constant 0 : i32
    %c0_i32_0 = arith.constant 0 : i32
    %c0_i32_1 = arith.constant 0 : i32
    return %c0_i32, %c0_i32_0 : i32, i32
  }
  func.func @transform_7(%arg0: i32, %arg1: i32) -> (i32, i32) {
    %c0_i32 = arith.constant 0 : i32
    %c0_i32_0 = arith.constant 0 : i32
    %c0_i32_1 = arith.constant 0 : i32
    return %c0_i32, %c0_i32_0 : i32, i32
  }
  func.func @transform_8(%arg0: i32, %arg1: i32) -> (i32, i32) {
    %c0_i32 = arith.constant 0 : i32
    %c0_i32_0 = arith.constant 0 : i32
    %c0_i32_1 = arith.constant 0 : i32
    return %c0_i32, %c0_i32_0 : i32, i32
  }
  func.func @transform_9(%arg0: i32, %arg1: i32) -> (i32, i32, i32) {
    %c0_i32 = arith.constant 0 : i32
    %c0_i32_0 = arith.constant 0 : i32
    return %arg0, %arg1, %c0_i32 : i32, i32, i32
  }
}

module attributes {stable_mosaic.version = 11 : i64} {
  func.func @resblock_kernel(%arg0: i32, %arg1: i32, %arg2: memref<1x8x32xbf16, #tpu.memory_space<vmem>>, %arg3: memref<32x96xbf16, #tpu.memory_space<vmem>>, %arg4: memref<1x96xf32, #tpu.memory_space<vmem>>, %arg5: memref<4x8x32xbf16, #tpu.memory_space<vmem>>, %arg6: memref<1x32xf32, #tpu.memory_space<vmem>>, %arg7: memref<32x128xbf16, #tpu.memory_space<vmem>>, %arg8: memref<1x128xf32, #tpu.memory_space<vmem>>, %arg9: memref<128x32xbf16, #tpu.memory_space<vmem>>, %arg10: memref<1x32xf32, #tpu.memory_space<vmem>>, %arg11: memref<1x8x32xbf16, #tpu.memory_space<vmem>>, %arg12: memref<4x8x8xbf16, #tpu.memory_space<vmem>>, %arg13: memref<4x8x8xbf16, #tpu.memory_space<vmem>>, %arg14: memref<4x8x8xbf16, #tpu.memory_space<vmem>>) attributes {dimension_semantics = [#tpu.dimension_semantics<parallel>, #tpu.dimension_semantics<arbitrary>], iteration_bounds = array<i64: 2, 1>, scalar_prefetch = 0 : i64, scratch_operands = 3 : i64, tpu.core_type = #tpu.core_type<tc>, window_params = [{transform_indices = @transform_0, window_bounds = array<i64: 1, 8, 32>}, {pipeline_mode = #tpu.pipeline_mode<synchronous>, transform_indices = @transform_1, window_bounds = array<i64: 32, 96>}, {pipeline_mode = #tpu.pipeline_mode<synchronous>, transform_indices = @transform_2, window_bounds = array<i64: 1, 96>}, {pipeline_mode = #tpu.pipeline_mode<synchronous>, transform_indices = @transform_3, window_bounds = array<i64: 4, 8, 32>}, {pipeline_mode = #tpu.pipeline_mode<synchronous>, transform_indices = @transform_4, window_bounds = array<i64: 1, 32>}, {pipeline_mode = #tpu.pipeline_mode<synchronous>, transform_indices = @transform_5, window_bounds = array<i64: 32, 128>}, {pipeline_mode = #tpu.pipeline_mode<synchronous>, transform_indices = @transform_6, window_bounds = array<i64: 1, 128>}, {pipeline_mode = #tpu.pipeline_mode<synchronous>, transform_indices = @transform_7, window_bounds = array<i64: 128, 32>}, {pipeline_mode = #tpu.pipeline_mode<synchronous>, transform_indices = @transform_8, window_bounds = array<i64: 1, 32>}, {transform_indices = @transform_9, window_bounds = array<i64: 1, 8, 32>}]} {
    %c0_i32 = arith.constant 0 : i32
    %0 = arith.cmpi eq, %arg1, %c0_i32 : i32
    %1 = arith.extui %0 : i1 to i32
    %c0_i32_0 = arith.constant 0 : i32
    %2 = arith.cmpi ne, %1, %c0_i32_0 : i32
    scf.if %2 {
      %c0_48 = arith.constant 0 : index
      %c0_49 = arith.constant 0 : index
      %c0_50 = arith.constant 0 : index
      %97 = vector.load %arg2[%c0_48, %c0_49, %c0_50] : memref<1x8x32xbf16, #tpu.memory_space<vmem>>, vector<1x8x32xbf16>
      %98 = vector.shape_cast %97 : vector<1x8x32xbf16> to vector<8x32xbf16>
      %99 = arith.extf %98 : vector<8x32xbf16> to vector<8x32xf32>
      %cst_51 = arith.constant dense<0.000000e+00> : vector<8xf32>
      %100 = vector.multi_reduction <add>, %99, %cst_51 [1] : vector<8x32xf32> to vector<8xf32>
      %101 = vector.shape_cast %100 : vector<8xf32> to vector<8x1xf32>
      %cst_52 = arith.constant 3.200000e+01 : f32
      %102 = vector.broadcast %cst_52 : f32 to vector<8x1xf32>
      %103 = arith.divf %101, %102 : vector<8x1xf32>
      %104 = vector.broadcast %103 : vector<8x1xf32> to vector<8x32xf32>
      %105 = arith.subf %99, %104 : vector<8x32xf32>
      %106 = arith.mulf %105, %105 : vector<8x32xf32>
      %cst_53 = arith.constant dense<0.000000e+00> : vector<8xf32>
      %107 = vector.multi_reduction <add>, %106, %cst_53 [1] : vector<8x32xf32> to vector<8xf32>
      %108 = vector.shape_cast %107 : vector<8xf32> to vector<8x1xf32>
      %cst_54 = arith.constant 3.200000e+01 : f32
      %109 = vector.broadcast %cst_54 : f32 to vector<8x1xf32>
      %110 = arith.divf %108, %109 : vector<8x1xf32>
      %111 = vector.broadcast %103 : vector<8x1xf32> to vector<8x32xf32>
      %112 = arith.subf %99, %111 : vector<8x32xf32>
      %cst_55 = arith.constant 9.99999974E-6 : f32
      %113 = vector.broadcast %cst_55 : f32 to vector<8x1xf32>
      %114 = arith.addf %110, %113 : vector<8x1xf32>
      %115 = math.rsqrt %114 : vector<8x1xf32>
      %116 = vector.broadcast %115 : vector<8x1xf32> to vector<8x32xf32>
      %117 = arith.mulf %112, %116 : vector<8x32xf32>
      %118 = arith.truncf %117 : vector<8x32xf32> to vector<8x32xbf16>
      %c0_56 = arith.constant 0 : index
      %c0_57 = arith.constant 0 : index
      %119 = vector.load %arg3[%c0_56, %c0_57] : memref<32x96xbf16, #tpu.memory_space<vmem>>, vector<32x96xbf16>
      %cst_58 = arith.constant dense<0.000000e+00> : vector<8x96xf32>
      %120 = tpu.matmul %118, %119, %cst_58 {dimension_numbers = #tpu.dot_dimension_numbers<[1], [0], [0], [1], [0, 0, 1, 1], [], []>} : vector<8x32xbf16>, vector<32x96xbf16>, vector<8x96xf32> -> vector<8x96xf32>
      %c0_59 = arith.constant 0 : index
      %c0_60 = arith.constant 0 : index
      %121 = vector.load %arg4[%c0_59, %c0_60] : memref<1x96xf32, #tpu.memory_space<vmem>>, vector<1x96xf32>
      %122 = vector.broadcast %121 : vector<1x96xf32> to vector<8x96xf32>
      %123 = arith.addf %120, %122 : vector<8x96xf32>
      %124 = vector.extract_strided_slice %123 {offsets = [0, 0], sizes = [8, 32], strides = [1, 1]} : vector<8x96xf32> to vector<8x32xf32>
      %125 = vector.extract_strided_slice %123 {offsets = [0, 32], sizes = [8, 32], strides = [1, 1]} : vector<8x96xf32> to vector<8x32xf32>
      %126 = vector.extract_strided_slice %123 {offsets = [0, 64], sizes = [8, 32], strides = [1, 1]} : vector<8x96xf32> to vector<8x32xf32>
      %127 = vector.shape_cast %124 : vector<8x32xf32> to vector<8x4x8xf32>
      %128 = tpu.transpose %127, [1, 0, 2] : vector<8x4x8xf32> -> vector<4x8x8xf32>
      %129 = arith.truncf %128 : vector<4x8x8xf32> to vector<4x8x8xbf16>
      %c0_61 = arith.constant 0 : index
      %c0_62 = arith.constant 0 : index
      %c0_63 = arith.constant 0 : index
      %130 = vector.load %arg12[%c0_61, %c0_62, %c0_63] : memref<4x8x8xbf16, #tpu.memory_space<vmem>>, vector<4x8x8xbf16>
      tpu.vector_store %arg12[%c0_61, %c0_62, %c0_63], %129 {strides = array<i32>} : memref<4x8x8xbf16, #tpu.memory_space<vmem>>, vector<4x8x8xbf16>,
      %131 = tpu.transpose %125, [1, 0] : vector<8x32xf32> -> vector<32x8xf32>
      %132 = vector.shape_cast %131 : vector<32x8xf32> to vector<4x8x8xf32>
      %133 = arith.truncf %132 : vector<4x8x8xf32> to vector<4x8x8xbf16>
      %c0_64 = arith.constant 0 : index
      %c0_65 = arith.constant 0 : index
      %c0_66 = arith.constant 0 : index
      %134 = vector.load %arg13[%c0_64, %c0_65, %c0_66] : memref<4x8x8xbf16, #tpu.memory_space<vmem>>, vector<4x8x8xbf16>
      tpu.vector_store %arg13[%c0_64, %c0_65, %c0_66], %133 {strides = array<i32>} : memref<4x8x8xbf16, #tpu.memory_space<vmem>>, vector<4x8x8xbf16>,
      %135 = vector.shape_cast %126 : vector<8x32xf32> to vector<8x4x8xf32>
      %136 = tpu.transpose %135, [1, 0, 2] : vector<8x4x8xf32> -> vector<4x8x8xf32>
      %137 = arith.truncf %136 : vector<4x8x8xf32> to vector<4x8x8xbf16>
      %c0_67 = arith.constant 0 : index
      %c0_68 = arith.constant 0 : index
      %c0_69 = arith.constant 0 : index
      %138 = vector.load %arg14[%c0_67, %c0_68, %c0_69] : memref<4x8x8xbf16, #tpu.memory_space<vmem>>, vector<4x8x8xbf16>
      tpu.vector_store %arg14[%c0_67, %c0_68, %c0_69], %137 {strides = array<i32>} : memref<4x8x8xbf16, #tpu.memory_space<vmem>>, vector<4x8x8xbf16>,
    } else {
    }
    %c8_i32 = arith.constant 8 : i32
    %3 = arith.muli %arg1, %c8_i32 : i32
    %4 = tpu.assume_multiple %3, 8 : i32
    %c0 = arith.constant 0 : index
    %5 = arith.index_cast %4 : i32 to index
    %c0_1 = arith.constant 0 : index
    %6 = vector.load %arg2[%c0, %5, %c0_1] : memref<1x8x32xbf16, #tpu.memory_space<vmem>>, vector<1x8x32xbf16>
    %7 = vector.shape_cast %6 : vector<1x8x32xbf16> to vector<8x32xbf16>
    %8 = arith.extf %7 : vector<8x32xbf16> to vector<8x32xf32>
    %c0_2 = arith.constant 0 : index
    %9 = arith.index_cast %4 : i32 to index
    %c0_3 = arith.constant 0 : index
    %10 = vector.load %arg12[%c0_2, %9, %c0_3] : memref<4x8x8xbf16, #tpu.memory_space<vmem>>, vector<4x8x8xbf16>
    %c0_4 = arith.constant 0 : index
    %c0_5 = arith.constant 0 : index
    %c0_6 = arith.constant 0 : index
    %11 = vector.load %arg13[%c0_4, %c0_5, %c0_6] : memref<4x8x8xbf16, #tpu.memory_space<vmem>>, vector<4x8x8xbf16>
    "tpu.trace_start"() <{level = 10 : i32, message = "hqd,hdk->hqk"}> : () -> ()
    %cst = arith.constant dense<0.000000e+00> : vector<4x8x8xf32>
    %12 = tpu.matmul %10, %11, %cst {dimension_numbers = #tpu.dot_dimension_numbers<[2], [1], [1], [2], [0, 0, 0, 1, 1, 2], [0], [0]>} : vector<4x8x8xbf16>, vector<4x8x8xbf16>, vector<4x8x8xf32> -> vector<4x8x8xf32>
    "tpu.trace_stop"() : () -> ()
    %cst_7 = arith.constant dense<0xFF800000> : vector<4x8xf32>
    %13 = vector.multi_reduction <maximumf>, %12, %cst_7 [2] : vector<4x8x8xf32> to vector<4x8xf32>
    %14 = vector.shape_cast %13 : vector<4x8xf32> to vector<4x8x1xf32>
    %15 = vector.broadcast %14 : vector<4x8x1xf32> to vector<4x8x8xf32>
    %16 = arith.subf %12, %15 : vector<4x8x8xf32>
    %17 = math.exp %16 : vector<4x8x8xf32>
    %cst_8 = arith.constant dense<0.000000e+00> : vector<4x8xf32>
    %18 = vector.multi_reduction <add>, %17, %cst_8 [2] : vector<4x8x8xf32> to vector<4x8xf32>
    %19 = vector.shape_cast %18 : vector<4x8xf32> to vector<4x8x1xf32>
    %20 = tpu.reciprocal %19 {approx = true} : vector<4x8x1xf32> -> vector<4x8x1xf32>
    %21 = vector.broadcast %20 : vector<4x8x1xf32> to vector<4x8x8xf32>
    %22 = arith.mulf %17, %21 : vector<4x8x8xf32>
    %23 = arith.truncf %22 : vector<4x8x8xf32> to vector<4x8x8xbf16>
    %c0_9 = arith.constant 0 : index
    %c0_10 = arith.constant 0 : index
    %c0_11 = arith.constant 0 : index
    %24 = vector.load %arg14[%c0_9, %c0_10, %c0_11] : memref<4x8x8xbf16, #tpu.memory_space<vmem>>, vector<4x8x8xbf16>
    "tpu.trace_start"() <{level = 10 : i32, message = "hqk,hkd->hqd"}> : () -> ()
    %cst_12 = arith.constant dense<0.000000e+00> : vector<4x8x8xf32>
    %25 = tpu.matmul %23, %24, %cst_12 {dimension_numbers = #tpu.dot_dimension_numbers<[2], [1], [1], [2], [0, 0, 0, 1, 1, 2], [0], [0]>} : vector<4x8x8xbf16>, vector<4x8x8xbf16>, vector<4x8x8xf32> -> vector<4x8x8xf32>
    "tpu.trace_stop"() : () -> ()
    %26 = arith.truncf %25 : vector<4x8x8xf32> to vector<4x8x8xbf16>
    %c0_13 = arith.constant 0 : index
    %c0_14 = arith.constant 0 : index
    %27 = vector.load %arg6[%c0_13, %c0_14] : memref<1x32xf32, #tpu.memory_space<vmem>>, vector<1x32xf32>
    %28 = vector.broadcast %27 : vector<1x32xf32> to vector<8x32xf32>
    %29 = arith.addf %8, %28 : vector<8x32xf32>
    %30 = vector.extract_strided_slice %26 {offsets = [0, 0, 0], sizes = [1, 8, 8], strides = [1, 1, 1]} : vector<4x8x8xbf16> to vector<1x8x8xbf16>
    %31 = vector.shape_cast %30 : vector<1x8x8xbf16> to vector<8x8xbf16>
    %c0_15 = arith.constant 0 : index
    %c0_16 = arith.constant 0 : index
    %c0_17 = arith.constant 0 : index
    %32 = vector.load %arg5[%c0_15, %c0_16, %c0_17] : memref<4x8x32xbf16, #tpu.memory_space<vmem>>, vector<1x8x32xbf16>
    %33 = vector.shape_cast %32 : vector<1x8x32xbf16> to vector<8x32xbf16>
    %cst_18 = arith.constant dense<0.000000e+00> : vector<8x32xf32>
    %34 = tpu.matmul %31, %33, %cst_18 {dimension_numbers = #tpu.dot_dimension_numbers<[1], [0], [0], [1], [0, 0, 1, 1], [], []>} : vector<8x8xbf16>, vector<8x32xbf16>, vector<8x32xf32> -> vector<8x32xf32>
    %35 = arith.addf %29, %34 : vector<8x32xf32>
    %36 = vector.extract_strided_slice %26 {offsets = [1, 0, 0], sizes = [1, 8, 8], strides = [1, 1, 1]} : vector<4x8x8xbf16> to vector<1x8x8xbf16>
    %37 = vector.shape_cast %36 : vector<1x8x8xbf16> to vector<8x8xbf16>
    %c1 = arith.constant 1 : index
    %c0_19 = arith.constant 0 : index
    %c0_20 = arith.constant 0 : index
    %38 = vector.load %arg5[%c1, %c0_19, %c0_20] : memref<4x8x32xbf16, #tpu.memory_space<vmem>>, vector<1x8x32xbf16>
    %39 = vector.shape_cast %38 : vector<1x8x32xbf16> to vector<8x32xbf16>
    %cst_21 = arith.constant dense<0.000000e+00> : vector<8x32xf32>
    %40 = tpu.matmul %37, %39, %cst_21 {dimension_numbers = #tpu.dot_dimension_numbers<[1], [0], [0], [1], [0, 0, 1, 1], [], []>} : vector<8x8xbf16>, vector<8x32xbf16>, vector<8x32xf32> -> vector<8x32xf32>
    %41 = arith.addf %35, %40 : vector<8x32xf32>
    %42 = vector.extract_strided_slice %26 {offsets = [2, 0, 0], sizes = [1, 8, 8], strides = [1, 1, 1]} : vector<4x8x8xbf16> to vector<1x8x8xbf16>
    %43 = vector.shape_cast %42 : vector<1x8x8xbf16> to vector<8x8xbf16>
    %c2 = arith.constant 2 : index
    %c0_22 = arith.constant 0 : index
    %c0_23 = arith.constant 0 : index
    %44 = vector.load %arg5[%c2, %c0_22, %c0_23] : memref<4x8x32xbf16, #tpu.memory_space<vmem>>, vector<1x8x32xbf16>
    %45 = vector.shape_cast %44 : vector<1x8x32xbf16> to vector<8x32xbf16>
    %cst_24 = arith.constant dense<0.000000e+00> : vector<8x32xf32>
    %46 = tpu.matmul %43, %45, %cst_24 {dimension_numbers = #tpu.dot_dimension_numbers<[1], [0], [0], [1], [0, 0, 1, 1], [], []>} : vector<8x8xbf16>, vector<8x32xbf16>, vector<8x32xf32> -> vector<8x32xf32>
    %47 = arith.addf %41, %46 : vector<8x32xf32>
    %48 = vector.extract_strided_slice %26 {offsets = [3, 0, 0], sizes = [1, 8, 8], strides = [1, 1, 1]} : vector<4x8x8xbf16> to vector<1x8x8xbf16>
    %49 = vector.shape_cast %48 : vector<1x8x8xbf16> to vector<8x8xbf16>
    %c3 = arith.constant 3 : index
    %c0_25 = arith.constant 0 : index
    %c0_26 = arith.constant 0 : index
    %50 = vector.load %arg5[%c3, %c0_25, %c0_26] : memref<4x8x32xbf16, #tpu.memory_space<vmem>>, vector<1x8x32xbf16>
    %51 = vector.shape_cast %50 : vector<1x8x32xbf16> to vector<8x32xbf16>
    %cst_27 = arith.constant dense<0.000000e+00> : vector<8x32xf32>
    %52 = tpu.matmul %49, %51, %cst_27 {dimension_numbers = #tpu.dot_dimension_numbers<[1], [0], [0], [1], [0, 0, 1, 1], [], []>} : vector<8x8xbf16>, vector<8x32xbf16>, vector<8x32xf32> -> vector<8x32xf32>
    %53 = arith.addf %47, %52 : vector<8x32xf32>
    %cst_28 = arith.constant dense<0.000000e+00> : vector<8xf32>
    %54 = vector.multi_reduction <add>, %53, %cst_28 [1] : vector<8x32xf32> to vector<8xf32>
    %55 = vector.shape_cast %54 : vector<8xf32> to vector<8x1xf32>
    %cst_29 = arith.constant 3.200000e+01 : f32
    %56 = vector.broadcast %cst_29 : f32 to vector<8x1xf32>
    %57 = arith.divf %55, %56 : vector<8x1xf32>
    %58 = vector.broadcast %57 : vector<8x1xf32> to vector<8x32xf32>
    %59 = arith.subf %53, %58 : vector<8x32xf32>
    %60 = arith.mulf %59, %59 : vector<8x32xf32>
    %cst_30 = arith.constant dense<0.000000e+00> : vector<8xf32>
    %61 = vector.multi_reduction <add>, %60, %cst_30 [1] : vector<8x32xf32> to vector<8xf32>
    %62 = vector.shape_cast %61 : vector<8xf32> to vector<8x1xf32>
    %cst_31 = arith.constant 3.200000e+01 : f32
    %63 = vector.broadcast %cst_31 : f32 to vector<8x1xf32>
    %64 = arith.divf %62, %63 : vector<8x1xf32>
    %65 = vector.broadcast %57 : vector<8x1xf32> to vector<8x32xf32>
    %66 = arith.subf %53, %65 : vector<8x32xf32>
    %cst_32 = arith.constant 9.99999974E-6 : f32
    %67 = vector.broadcast %cst_32 : f32 to vector<8x1xf32>
    %68 = arith.addf %64, %67 : vector<8x1xf32>
    %69 = math.rsqrt %68 : vector<8x1xf32>
    %70 = vector.broadcast %69 : vector<8x1xf32> to vector<8x32xf32>
    %71 = arith.mulf %66, %70 : vector<8x32xf32>
    %72 = arith.truncf %71 : vector<8x32xf32> to vector<8x32xbf16>
    %c0_33 = arith.constant 0 : index
    %c0_34 = arith.constant 0 : index
    %73 = vector.load %arg7[%c0_33, %c0_34] : memref<32x128xbf16, #tpu.memory_space<vmem>>, vector<32x128xbf16>
    %cst_35 = arith.constant dense<0.000000e+00> : vector<8x128xf32>
    %74 = tpu.matmul %72, %73, %cst_35 {dimension_numbers = #tpu.dot_dimension_numbers<[1], [0], [0], [1], [0, 0, 1, 1], [], []>} : vector<8x32xbf16>, vector<32x128xbf16>, vector<8x128xf32> -> vector<8x128xf32>
    %c0_36 = arith.constant 0 : index
    %c0_37 = arith.constant 0 : index
    %75 = vector.load %arg8[%c0_36, %c0_37] : memref<1x128xf32, #tpu.memory_space<vmem>>, vector<1x128xf32>
    %76 = vector.broadcast %75 : vector<1x128xf32> to vector<8x128xf32>
    %77 = arith.addf %74, %76 : vector<8x128xf32>
    %cst_38 = arith.constant 1.702000e+00 : f32
    %78 = vector.broadcast %cst_38 : f32 to vector<8x128xf32>
    %79 = arith.mulf %78, %77 : vector<8x128xf32>
    %80 = arith.negf %79 : vector<8x128xf32>
    %81 = math.exp %80 : vector<8x128xf32>
    %cst_39 = arith.constant 1.000000e+00 : f32
    %82 = vector.broadcast %cst_39 : f32 to vector<8x128xf32>
    %83 = arith.addf %82, %81 : vector<8x128xf32>
    %84 = arith.divf %82, %83 : vector<8x128xf32>
    %85 = arith.mulf %77, %84 : vector<8x128xf32>
    %86 = arith.truncf %85 : vector<8x128xf32> to vector<8x128xbf16>
    %c0_40 = arith.constant 0 : index
    %c0_41 = arith.constant 0 : index
    %87 = vector.load %arg9[%c0_40, %c0_41] : memref<128x32xbf16, #tpu.memory_space<vmem>>, vector<128x32xbf16>
    %cst_42 = arith.constant dense<0.000000e+00> : vector<8x32xf32>
    %88 = tpu.matmul %86, %87, %cst_42 {dimension_numbers = #tpu.dot_dimension_numbers<[1], [0], [0], [1], [0, 0, 1, 1], [], []>} : vector<8x128xbf16>, vector<128x32xbf16>, vector<8x32xf32> -> vector<8x32xf32>
    %c0_43 = arith.constant 0 : index
    %c0_44 = arith.constant 0 : index
    %89 = vector.load %arg10[%c0_43, %c0_44] : memref<1x32xf32, #tpu.memory_space<vmem>>, vector<1x32xf32>
    %90 = vector.broadcast %89 : vector<1x32xf32> to vector<8x32xf32>
    %91 = arith.addf %88, %90 : vector<8x32xf32>
    %92 = arith.addf %53, %91 : vector<8x32xf32>
    %93 = arith.truncf %92 : vector<8x32xf32> to vector<8x32xbf16>
    %c0_45 = arith.constant 0 : index
    %c0_46 = arith.constant 0 : index
    %c0_47 = arith.constant 0 : index
    %94 = vector.load %arg11[%c0_45, %c0_46, %c0_47] : memref<1x8x32xbf16, #tpu.memory_space<vmem>>, vector<1x8x32xbf16>
    %95 = vector.shape_cast %94 : vector<1x8x32xbf16> to vector<8x32xbf16>
    %96 = vector.shape_cast %93 : vector<8x32xbf16> to vector<1x8x32xbf16>
    tpu.vector_store %arg11[%c0_45, %c0_46, %c0_47], %96 {strides = array<i32>} : memref<1x8x32xbf16, #tpu.memory_space<vmem>>, vector<1x8x32xbf16>,
    return
  }
  func.func @transform_0(%arg0: i32, %arg1: i32) -> (i32, i32, i32) {
    %c0_i32 = arith.constant 0 : i32
    %c0_i32_0 = arith.constant 0 : i32
    %c0_i32_1 = arith.constant 0 : i32
    return %arg0, %c0_i32, %c0_i32_0 : i32, i32, i32
  }
  func.func @transform_1(%arg0: i32, %arg1: i32) -> (i32, i32) {
    %c0_i32 = arith.constant 0 : i32
    %c0_i32_0 = arith.constant 0 : i32
    %c0_i32_1 = arith.constant 0 : i32
    return %c0_i32, %c0_i32_0 : i32, i32
  }
  func.func @transform_2(%arg0: i32, %arg1: i32) -> (i32, i32) {
    %c0_i32 = arith.constant 0 : i32
    %c0_i32_0 = arith.constant 0 : i32
    %c0_i32_1 = arith.constant 0 : i32
    return %c0_i32, %c0_i32_0 : i32, i32
  }
  func.func @transform_3(%arg0: i32, %arg1: i32) -> (i32, i32, i32) {
    %c0_i32 = arith.constant 0 : i32
    %c0_i32_0 = arith.constant 0 : i32
    %c0_i32_1 = arith.constant 0 : i32
    %c0_i32_2 = arith.constant 0 : i32
    return %c0_i32, %c0_i32_0, %c0_i32_1 : i32, i32, i32
  }
  func.func @transform_4(%arg0: i32, %arg1: i32) -> (i32, i32) {
    %c0_i32 = arith.constant 0 : i32
    %c0_i32_0 = arith.constant 0 : i32
    %c0_i32_1 = arith.constant 0 : i32
    return %c0_i32, %c0_i32_0 : i32, i32
  }
  func.func @transform_5(%arg0: i32, %arg1: i32) -> (i32, i32) {
    %c0_i32 = arith.constant 0 : i32
    %c0_i32_0 = arith.constant 0 : i32
    %c0_i32_1 = arith.constant 0 : i32
    return %c0_i32, %c0_i32_0 : i32, i32
  }
  func.func @transform_6(%arg0: i32, %arg1: i32) -> (i32, i32) {
    %c0_i32 = arith.constant 0 : i32
    %c0_i32_0 = arith.constant 0 : i32
    %c0_i32_1 = arith.constant 0 : i32
    return %c0_i32, %c0_i32_0 : i32, i32
  }
  func.func @transform_7(%arg0: i32, %arg1: i32) -> (i32, i32) {
    %c0_i32 = arith.constant 0 : i32
    %c0_i32_0 = arith.constant 0 : i32
    %c0_i32_1 = arith.constant 0 : i32
    return %c0_i32, %c0_i32_0 : i32, i32
  }
  func.func @transform_8(%arg0: i32, %arg1: i32) -> (i32, i32) {
    %c0_i32 = arith.constant 0 : i32
    %c0_i32_0 = arith.constant 0 : i32
    %c0_i32_1 = arith.constant 0 : i32
    return %c0_i32, %c0_i32_0 : i32, i32
  }
  func.func @transform_9(%arg0: i32, %arg1: i32) -> (i32, i32, i32) {
    %c0_i32 = arith.constant 0 : i32
    %c0_i32_0 = arith.constant 0 : i32
    return %arg0, %arg1, %c0_i32 : i32, i32, i32
  }
}

</mosaic_0001>

<bundles_post_ra>
// kernel: tpu_custom_call.1
= control target key start
LH: loop header
LB: loop body
LE: loop exit
PB: predicated region body
PF: predicated region fallthrough
CT: control target
= control target key end

     0   :  { %14 = vsyncpa [#allocation6], 0  ;;  %s2534_s0 = inlined_call_operand.vmem [shape: bf16[2,8,32], index: 0, kind: input, shape index: {}]   ;;  %s2535_s1 = inlined_call_operand.vmem [shape: bf16[32,96], index: 1, kind: input, shape index: {}]   ;;  %s2536_s2 = inlined_call_operand.vmem [shape: f32[1,96], index: 2, kind: input, shape index: {}]   ;;  %s2537_s3 = inlined_call_operand.vmem [shape: bf16[4,8,32], index: 3, kind: input, shape index: {}]   ;;  %s2538_s4 = inlined_call_operand.vmem [shape: f32[1,32], index: 4, kind: input, shape index: {}]   ;;  %s2539_s5 = inlined_call_operand.vmem [shape: bf16[32,128], index: 5, kind: input, shape index: {}]   ;;  %s2540_s6 = inlined_call_operand.vmem [shape: f32[1,128], index: 6, kind: input, shape index: {}]   ;;  %s2541_s7 = inlined_call_operand.vmem [shape: bf16[128,32], index: 7, kind: input, shape index: {}]   ;;  %s2542_s8 = inlined_call_operand.vmem [shape: f32[1,32], index: 8, kind: input, shape index: {}]   ;;  %s2543_s9 = inlined_call_operand.hbm [shape: bf16[2,8,32], index: 9, kind: output, shape index: {}]  }
   0x1   :  { %16 = vsyncpa [#allocation6 + $0x1], 0  ;;  %s2173_s30 = smov 0   ;;  %s2175_s10 = smov 0  }
   0x2   :  { %s2177_s11 = smov 0   ;;  %s2179_s12 = smov 0  }
   0x3   :  { %s2181_s13 = smov 0   ;;  %s2183_s14 = smov 0  }
   0x4 LB: > { %s1724_s15 = sadd.s32 4294967295, %s2111_s14   ;;  %s1725_s16 = sadd.s32 4294967294, %s2111_s14   ;;  %s2111_s14 = sphi %s2183_s14, %s22_s14   ;;  %s2107_s13 = sphi %s2181_s13, %s2550_s13   ;;  %s2103_s12 = sphi %s2179_s12, %s2549_s12   ;;  %s2099_s11 = sphi %s2177_s11, %s2548_s11   ;;  %s2095_s10 = sphi %s2175_s10, %s2547_s10   ;;  %s2091_s30 = sphi %s2173_s30, %s2546_s30  }
   0x5   : > { %s34_s17 = sadd.s32 1, %s2107_s13  ;;  %s237_s18 = sadd.s32 1, %s2099_s11 }
   0x6   : > { %p36_p0 = scmp.ge.s32.totalorder %s34_s17, 2  ;;  %p247_p1 = scmp.ne.s32.totalorder %s2099_s11, %s2095_s10 }
   0x7   : > { %p248_p2 = scmp.eq.s32.totalorder %s1724_s15, 1  ;;  %p253_p3 = scmp.ne.s32.totalorder %s2095_s10, %s2091_s30 }
   0x8   : > { %s2552_s17 = smov (%p36_p0, %s34_s17), 0  ;;  %p254_p5 = scmp.eq.s32.totalorder %s1725_s16, 1 }
   0x9   : > { %p2213_p4 = por %p248_p2, %p247_p1  ;;  %s232_s20 = ssub.s32 %s2107_s13, %s2552_s17 }
   0xa   : > { %p1728_p6 = scmp.ge.s32.totalorder %s2111_s14, 1  ;;  %p235_p7 = scmp.eq.s32.totalorder %s232_s20, 0 }
   0xb   : > { %p2220_p8 = por %p254_p5, %p253_p3  ;;  %p303_p9 = scmp.lt.s32.totalorder %s2111_s14, 3 }
   0xc   : > { %s2226_s22 = scalar_select %p235_p7, %s2099_s11, %s237_s18  }
   0xd   : > { %p304_p10 = pnand %p1728_p6, %p303_p9 }
   0xe   : > { %p338_p11 = scmp.lt.s32.totalorder (!%p304_p10), %s2103_s12, 1  ;;  %vm349_vm0 = vcmask (!%p304_p10), 261120   ;;  %v1997_v8 = vld [vmem:[%s2535_s1] sm:$0xff] (!%p304_p10)   ;;  %v2113_v9 = vmov (!%p304_p10), 0.0   ;;  %vm2114_vm1 = vmmov (!%p304_p10), 0   ;;  %v1998_v10 = vld [vmem:[%s2535_s1 + $0x8] sm:$0xff] (!%p304_p10)   ;;  %v446_v25 = vlaneseq (!%p304_p10) }
   0xf   : > { %307 = sbr.rel (%p304_p10) target bundleno = 2667 (0xa6b), region = 56  ;;  %1812 = vmatprep.subr.bf16.mxu0 (!%p304_p10), %v2113_v9  ;;  %1816 = vmatprep.mubr.msk.bf16.mxu0 (!%p304_p10), %vm2114_vm1, %v2113_v9  ;;  %v1731_v17 = vld [vmem:[%s2536_s2] ss:$0 sm:$0xff] (!%p304_p10)  ;;  %s2117_s25 = smov (!%p304_p10), 120   ;;  %v2119_v23 = vmov (!%p304_p10), 1983009808  }
  0x10   : > { %1813 = vmatpush3.bf16.msra.mxu0 (!%p304_p10), %v1997_v8  ;;  %1826 = vmatprep.subr.bf16.mxu1 (!%p304_p10), %v2113_v9  ;;  %s2118_s26 = smov (!%p304_p10), 104   ;;  %v444_v24 = vunpack.c.l.s4 (!%p304_p10), %v2119_v23  ;;  %v2120_v27 = vmov (!%p304_p10), 1934713408   ;;  %v447_v30 = vshrl.u32 (!%p304_p10), %v446_v25, 7  ;;  %vm581_vm2 = vcmask (!%p304_p10), 60416   ;;  %s2121_s28 = smov (!%p304_p10), 64  }
  0x11   : > { %1814 = vmatprep.subr.bf16.mxu0 (!%p304_p10), %v2113_v9  ;;  %1828 = vmatprep.mubr.msk.bf16.mxu1 (!%p304_p10), %vm2114_vm1, %v2113_v9  ;;  %v476_v28 = vunpack.c.l.s4 (!%p304_p10), %v2120_v27  ;;  %vm806_vm3 = vcmask (!%p304_p10), 1043456   ;;  %vm802_vm4 = vcmask (!%p304_p10), 64512   ;;  %s1770_s18 = sshll.u32 (!%p304_p10), %s2103_s12, 6  ;;  %vm1635_vm5 = vcmask (!%p304_p10), 257024  }
  0x12   : > { %v445_v29 = vunpack.c.0.s8 (!%p304_p10), %v444_v24 }
  0x13   : > { %v477_v33 = vunpack.c.0.s8 (!%p304_p10), %v476_v28 }
  0x14   : > { %1815 = vmatpush3.bf16.msra.mxu0 (!%p304_p10), %v1998_v10  ;;  %v2268_v34 = vsub.s32 (!%p304_p10), %v445_v29, %v447_v30 }
  0x15   : > { %1820 = vmatprep.subr.bf16.mxu0 (!%p304_p10), %v2113_v9  ;;  %v2280_v40 = vsub.s32 (!%p304_p10), %v477_v33, %v447_v30 }
  0x16   : > { %s339_s23 = scalar_select %p338_p11, %s2103_s12, 1 }
  0x18   : > { %s1730_s24 = sshll.u32 %s339_s23, 2  ;;  %s2115_s23 = smov 112  }
  0x19   : > { %s2233_s27 = scalar_lea.vmem %s2534_s0, %s1730_s24  ;;  %s2116_s24 = smov 96  }
  0x1a   : > { %v347_v0 = vld [vmem:[%s2233_s27] sm:$0xf] }
  0x1b   : > { %v348_v1 = vunpack.c.l.bf16 %v347_v0 }
  0x1d   : > { %v350_v2 = vsel %vm349_vm0, %v348_v1, 0.0 }
  0x1e   : > { %351 = vadd.xlane.f32.xlu0 %v350_v2 }
  0xab   : > { %v352_v3 = vpop.xlane.xlu0 %351 }
  0xac   : > { %v354_v4 = vmul.f32 0.03125, %v352_v3 }
  0xae   : > { %v355_v5 = vsub.f32 %v348_v1, %v354_v4 }
  0xb0   : > { %v356_v6 = vmul.f32 %v355_v5, %v355_v5 }
  0xb2   : > { %v357_v7 = vsel %vm349_vm0, %v356_v6, 0.0 }
  0xb3   : > { %358 = vadd.xlane.f32.xlu0 %v357_v7 }
 0x140   : > { %v359_v11 = vpop.xlane.xlu0 %358 }
 0x141   : > { %v360_v12 = vmul.f32 0.03125, %v359_v11 }
 0x143   : > { %v361_v13 = vadd.f32 1e-05, %v360_v12 }
 0x145   : > { %2009 = vrsqrt.f32 %v361_v13 }
 0x14f   : > { %v2010_v14 = vpop.eup %2009 }
 0x150   : > { %v363_v15 = vmul.f32 %v2010_v14, %v355_v5 }
 0x152   : > { %v364_v16 = vpack.c.bf16 %v363_v15, %v363_v15 }
 0x154   : > { %1817 = vmatmul.mubr.msk.bf16.vlgmr.msra.gmra.mrb[0].mxu0 %vm349_vm0, %v364_v16 }
 0x155   : > { %1822 = vmatprep.mubr.msk.bf16.mxu0 %vm2114_vm1, %v2113_v9 }
 0x227   : > { %v425_v18 = vpop.f32.mrb[0].mxu0 }
 0x228   : > { %v2258_v19 = vadd.f32 %v1731_v17, %v425_v18  ;;  %v1818_v20 = vpop.f32.mrb[1].mxu0 }
 0x229   : > { %v428_v21 = vpop.f32.mrb[2].mxu0 }
 0x22a   : > { %435 = vrot.lane.b32.xlu0 %v2258_v19, %s2115_s23  ;;  %586 = vrot.lane.b32.xlu1 %v2258_v19, %s2116_s24  ;;  %v1819_v22 = vpop.f32.mrb[3].mxu0 }
 0x22e   : > { %432 = vrot.lane.b32.xlu1 %v2258_v19, %s2117_s25 }
 0x232   : > { %438 = vrot.lane.b32.xlu1 %v2258_v19, %s2118_s26  ;;  %s2487_s26 = scalar_lea.hbm %s2543_s9, %s1770_s18 }
 0x29c   : > { %v587_v26 = vpop.permute.xlu1 %586  ;;  %v2264_v31 = vpop.permute.xlu0 %435 }
 0x29d   : > { %589 = vxpose.xlu1.b32.start.end [1/1] (short) (narrow) %v587_v26, 32  ;;  %v441_v35 = vcombine.low %v2258_v19, %v2264_v31  ;;  %v442_v36 = vcombine.high %v2258_v19, %v2264_v31 }
 0x29f   : > { %v449_v41 = vrot.slane %v441_v35, %v2268_v34  ;;  %v456_v42 = vrot.slane %v442_v36, %v2268_v34 }
 0x2a0   : > { %v2266_v32 = vpop.permute.xlu1 %432 }
 0x2a4   : > { %v2274_v37 = vpop.permute.xlu1 %438 }
 0x2a5   : > { %v457_v38 = vcombine.low %v2266_v32, %v2274_v37  ;;  %v458_v39 = vcombine.high %v2266_v32, %v2274_v37 }
 0x2a7   : > { %v465_v43 = vrot.slane %v457_v38, %v2268_v34  ;;  %v472_v44 = vrot.slane %v458_v39, %v2268_v34 }
 0x2a9   : > { %v473_v45 = vcombine.low %v449_v41, %v465_v43  ;;  %v474_v46 = vcombine.high %v449_v41, %v465_v43  ;;  %v489_v47 = vcombine.low %v456_v42, %v472_v44  ;;  %v490_v48 = vcombine.high %v456_v42, %v472_v44 }
 0x2ab   : > { %v481_v49 = vrot.slane %v473_v45, %v2280_v40  ;;  %v488_v50 = vrot.slane %v474_v46, %v2280_v40  ;;  %v497_v51 = vrot.slane %v489_v47, %v2280_v40  ;;  %v504_v52 = vrot.slane %v490_v48, %v2280_v40 }
 0x2ad   : > { %v509_v53 = vcombine.low %v481_v49, %v488_v50  ;;  %v1735_v54 = vcombine.high %v481_v49, %v488_v50  ;;  %v525_v55 = vcombine.low %v497_v51, %v504_v52  ;;  %v1736_v56 = vcombine.high %v497_v51, %v504_v52 }
 0x2af   : > { %v516_v57 = vrot.slane %v509_v53, %v2268_v34  ;;  %v524_v58 = vrot.slane %v1735_v54, %v2268_v34  ;;  %v532_v59 = vrot.slane %v525_v55, %v2268_v34  ;;  %v540_v60 = vrot.slane %v1736_v56, %v2268_v34 }
 0x2b1   : > { %v541_v61 = vcombine.low %v516_v57, %v524_v58  ;;  %v542_v62 = vcombine.high %v516_v57, %v524_v58  ;;  %v557_v63 = vcombine.low %v532_v59, %v540_v60  ;;  %v558_v0 = vcombine.high %v532_v59, %v540_v60 }
 0x2b3   : > { %v549_v1 = vrot.slane %v541_v61, %v2280_v40  ;;  %v556_v2 = vrot.slane %v542_v62, %v2280_v40  ;;  %v565_v3 = vrot.slane %v557_v63, %v2280_v40  ;;  %v572_v4 = vrot.slane %v558_v0, %v2280_v40 }
 0x2b5   : > { %v573_v5 = vcombine.low %v549_v1, %v565_v3  ;;  %v574_v6 = vcombine.high %v549_v1, %v565_v3  ;;  %v575_v7 = vcombine.low %v556_v2, %v572_v4  ;;  %v576_v8 = vcombine.high %v556_v2, %v572_v4 }
 0x2b7   : > { %v577_v10 = vpack.c.bf16 %v573_v5, %v573_v5  ;;  %v578_v11 = vpack.c.bf16 %v574_v6, %v574_v6  ;;  %v579_v12 = vpack.c.bf16 %v575_v7, %v575_v7  ;;  %v580_v13 = vpack.c.bf16 %v576_v8, %v576_v8 }
 0x2b9   : > { %582 = vst.msk [vmem:[#allocation2] sm:$0xf] %vm581_vm2, %v577_v10  ;;  %583 = vst.msk [vmem:[#allocation2 + $0x4] sm:$0xf] %vm581_vm2, %v578_v11 }
 0x2ba   : > { %584 = vst.msk [vmem:[#allocation2 + $0x8] sm:$0xf] %vm581_vm2, %v579_v12  ;;  %585 = vst.msk [vmem:[#allocation2 + $0xc] sm:$0xf] %vm581_vm2, %v580_v13 }
 0x2c0   : > { %v794_v25 = vld [vmem:[#allocation2] sm:$0xf]  ;;  %v795_v28 = vld [vmem:[#allocation2 + $0x4] sm:$0xf] }
 0x2c1   : > { %v796_v33 = vld [vmem:[#allocation2 + $0x8] sm:$0xf]  ;;  %v797_v38 = vld [vmem:[#allocation2 + $0xc] sm:$0xf] }
 0x31d   : > { %v605_v14 = vpop.trf.xlu1 }
 0x31e   : > { %v621_v15 = vpack.c.bf16 %v605_v14, %v605_v14 }
 0x320   : > { %625 = vst.msk [vmem:[#allocation3] sm:$0xf] %vm581_vm2, %v621_v15 }
 0x321   : > { %v606_v16 = vpop.trf.xlu1 }
 0x322   : > { %v622_v17 = vpack.c.bf16 %v606_v16, %v606_v16 }
 0x324   : > { %626 = vst.msk [vmem:[#allocation3 + $0x4] sm:$0xf] %vm581_vm2, %v622_v17 }
 0x325   : > { %v607_v18 = vpop.trf.xlu1 }
 0x326   : > { %v623_v20 = vpack.c.bf16 %v607_v18, %v607_v18 }
 0x327   : > { %v798_v21 = vld [vmem:[#allocation3] sm:$0xf] }
 0x328   : > { %627 = vst.msk [vmem:[#allocation3 + $0x8] sm:$0xf] %vm581_vm2, %v623_v20  ;;  %v808_v22 = vsel %vm806_vm3, %v798_v21, 0 }
 0x329   : > { %1821 = vmatpush3.bf16.msra.mxu0 %v808_v22  ;;  %v608_v23 = vpop.trf.xlu1 }
 0x32a   : > { %v624_v24 = vpack.c.bf16 %v608_v23, %v608_v23  ;;  %1832 = vmatprep.subr.bf16.mxu0 %v2113_v9 }
 0x32b   : > { %v799_v26 = vld [vmem:[#allocation3 + $0x4] sm:$0xf] }
 0x32c   : > { %628 = vst.msk [vmem:[#allocation3 + $0xc] sm:$0xf] %vm581_vm2, %v624_v24  ;;  %1823 = vmatmul.mubr.msk.bf16.vlgmr.msra.gmra.mrb[4].mxu0 %vm802_vm4, %v794_v25  ;;  %v854_v27 = vsel %vm806_vm3, %v799_v26, 0 }
 0x32d   : > { %1827 = vmatpush3.bf16.msra.mxu1 %v854_v27  ;;  %1834 = vmatprep.mubr.msk.bf16.mxu0 %vm2114_vm1, %v2113_v9 }
 0x32e   : > { %1838 = vmatprep.subr.bf16.mxu1 %v2113_v9 }
 0x32f   : > { %v800_v29 = vld [vmem:[#allocation3 + $0x8] sm:$0xf] }
 0x330   : > { %1829 = vmatmul.mubr.msk.bf16.vlgmr.msra.gmra.mrb[0].mxu1 %vm802_vm4, %v795_v28  ;;  %v900_v30 = vsel %vm806_vm3, %v800_v29, 0 }
 0x331   : > { %1833 = vmatpush3.bf16.msra.mxu0 %v900_v30  ;;  %1840 = vmatprep.mubr.msk.bf16.mxu1 %vm2114_vm1, %v2113_v9 }
 0x332   : > { %1844 = vmatprep.subr.bf16.mxu0 %v2113_v9 }
 0x333   : > { %v801_v35 = vld [vmem:[#allocation3 + $0xc] sm:$0xf] }
 0x334   : > { %1835 = vmatmul.mubr.msk.bf16.vlgmr.msra.gmra.mrb[8].mxu0 %vm802_vm4, %v796_v33  ;;  %v946_v36 = vsel %vm806_vm3, %v801_v35, 0 }
 0x335   : > { %1839 = vmatpush3.bf16.msra.mxu1 %v946_v36  ;;  %1846 = vmatprep.mubr.msk.bf16.mxu0 %vm2114_vm1, %v2113_v9 }
 0x336   : > { %1850 = vmatprep.subr.bf16.mxu1 %v2113_v9 }
 0x338   : > { %1841 = vmatmul.mubr.msk.bf16.vlgmr.msra.gmra.mrb[4].mxu1 %vm802_vm4, %v797_v38 }
 0x339   : > { %1852 = vmatprep.mubr.msk.bf16.mxu1 %vm2114_vm1, %v2113_v9 }
 0x3ff   : > { %v844_v39 = vpop.f32.mrb[4].mxu0 }
 0x400   : > { %v1824_v41 = vpop.f32.mrb[5].mxu0  ;;  %v988_v42 = vsel %vm802_vm4, %v844_v39, -inf }
 0x401   : > { %989 = vmax.xlane.f32.xlu0 %v988_v42  ;;  %v847_v43 = vpop.f32.mrb[6].mxu0 }
 0x402   : > { %v1825_v44 = vpop.f32.mrb[7].mxu0 }
 0x403   : > { %v890_v45 = vpop.f32.mrb[0].mxu1 }
 0x404   : > { %v1830_v46 = vpop.f32.mrb[1].mxu1  ;;  %v991_v47 = vsel %vm802_vm4, %v890_v45, -inf }
 0x405   : > { %992 = vmax.xlane.f32.xlu1 %v991_v47  ;;  %v893_v48 = vpop.f32.mrb[2].mxu1 }
 0x406   : > { %v1831_v49 = vpop.f32.mrb[3].mxu1 }
 0x407   : > { %v936_v50 = vpop.f32.mrb[8].mxu0 }
 0x408   : > { %v1836_v51 = vpop.f32.mrb[9].mxu0  ;;  %v994_v58 = vsel %vm802_vm4, %v936_v50, -inf }
 0x409   : > { %v939_v52 = vpop.f32.mrb[10].mxu0 }
 0x40a   : > { %v1837_v53 = vpop.f32.mrb[11].mxu0 }
 0x40b   : > { %v982_v54 = vpop.f32.mrb[4].mxu1 }
 0x40c   : > { %v1842_v55 = vpop.f32.mrb[5].mxu1  ;;  %v997_v59 = vsel %vm802_vm4, %v982_v54, -inf }
 0x40d   : > { %v985_v56 = vpop.f32.mrb[6].mxu1 }
 0x40e   : > { %v1843_v57 = vpop.f32.mrb[7].mxu1 }
 0x417   : > { %629 = vrot.lane.b32.xlu0 %v2258_v19, %s2121_s28 }
 0x41b   : > { %631 = vrot.lane.b32.xlu0 %v2266_v32, %s2121_s28 }
 0x43a   : > { %995 = vmax.xlane.f32.xlu0 %v994_v58 }
 0x450   : > { %633 = vrot.lane.b32.xlu0 %v2264_v31, %s2121_s28 }
 0x46f   : > { %998 = vmax.xlane.f32.xlu0 %v997_v59 }
 0x485   : > { %635 = vrot.lane.b32.xlu0 %v2274_v37, %s2121_s28 }
 0x48e   : > { %v990_v60 = vpop.xlane.xlu0 %989 }
 0x48f   : > { %v1000_v61 = vsub.f32 %v844_v39, %v990_v60 }
 0x491   : > { %v1004_v62 = vmul.f32 1.442695, %v1000_v61 }
 0x492   : > { %v993_v63 = vpop.xlane.xlu1 %992  ;;  %v630_v37 = vpop.permute.xlu0 %629 }
 0x493   : > { %v1001_v0 = vsub.f32 %v890_v45, %v993_v63  ;;  %2011 = vpow2.f32 %v1004_v62 }
 0x495   : > { %v1006_v1 = vmul.f32 1.442695, %v1001_v0 }
 0x496   : > { %v632_v3 = vpop.permute.xlu0 %631 }
 0x497   : > { %2013 = vpow2.f32 %v1006_v1 }
 0x49d   : > { %v2334_v19 = vpop.eup %2011 }
 0x49e   : > { %v1012_v2 = vsel %vm802_vm4, %v2334_v19, 0.0 }
 0x4a1   : > { %v2336_v32 = vpop.eup %2013 }
 0x4a2   : > { %v1015_v31 = vsel %vm802_vm4, %v2336_v32, 0.0 }
 0x4a3   : > { %1016 = vadd.xlane.f32.xlu1 %v1015_v31 }
 0x4a4   : > { %1013 = vadd.xlane.f32.xlu0 %v1012_v2 }
 0x4c7   : > { %v996_v4 = vpop.xlane.xlu0 %995 }
 0x4c8   : > { %v1002_v5 = vsub.f32 %v936_v50, %v996_v4 }
 0x4ca   : > { %v1008_v6 = vmul.f32 1.442695, %v1002_v5 }
 0x4cb   : > { %v634_v10 = vpop.permute.xlu0 %633 }
 0x4cc   : > { %2015 = vpow2.f32 %v1008_v6  ;;  %v641_v13 = vcombine.low %v630_v37, %v634_v10  ;;  %v642_v14 = vcombine.high %v630_v37, %v634_v10 }
 0x4ce   : > { %v649_v20 = vrot.slane %v641_v13, %v2268_v34  ;;  %v656_v21 = vrot.slane %v642_v14, %v2268_v34 }
 0x4d6   : > { %v2342_v7 = vpop.eup %2015 }
 0x4d7   : > { %v1018_v8 = vsel %vm802_vm4, %v2342_v7, 0.0 }
 0x4d8   : > { %1019 = vadd.xlane.f32.xlu1 %v1018_v8 }
 0x4fc   : > { %v999_v11 = vpop.xlane.xlu0 %998 }
 0x4fd   : > { %v1003_v12 = vsub.f32 %v982_v54, %v999_v11 }
 0x4ff   : > { %v1010_v15 = vmul.f32 1.442695, %v1003_v12 }
 0x500   : > { %v636_v16 = vpop.permute.xlu0 %635 }
 0x501   : > { %2017 = vpow2.f32 %v1010_v15  ;;  %v657_v17 = vcombine.low %v632_v3, %v636_v16  ;;  %v658_v18 = vcombine.high %v632_v3, %v636_v16  ;;  %v1236_v15 = vld [vmem:[%s2537_s3] sm:$0xf] }
 0x502   : > { %v1241_v16 = vsel %vm806_vm3, %v1236_v15, 0  ;;  %v1755_v15 = vld [vmem:[%s2540_s6] ss:$0 sm:$0xff] }
 0x503   : > { %v665_v22 = vrot.slane %v657_v17, %v2268_v34  ;;  %v672_v23 = vrot.slane %v658_v18, %v2268_v34 }
 0x505   : > { %v673_v24 = vcombine.low %v649_v20, %v665_v22  ;;  %v674_v25 = vcombine.high %v649_v20, %v665_v22  ;;  %v689_v26 = vcombine.low %v656_v21, %v672_v23  ;;  %v690_v27 = vcombine.high %v656_v21, %v672_v23  ;;  %v1749_v21 = vld [vmem:[%s2537_s3 + $0x4] sm:$0xf] }
 0x507   : > { %v681_v28 = vrot.slane %v673_v24, %v2280_v40  ;;  %v688_v29 = vrot.slane %v674_v25, %v2280_v40  ;;  %v697_v30 = vrot.slane %v689_v26, %v2280_v40  ;;  %v704_v33 = vrot.slane %v690_v27, %v2280_v40 }
 0x509   : > { %v709_v35 = vcombine.low %v681_v28, %v688_v29  ;;  %v1737_v36 = vcombine.high %v681_v28, %v688_v29  ;;  %v725_v38 = vcombine.low %v697_v30, %v704_v33  ;;  %v1738_v39 = vcombine.high %v697_v30, %v704_v33 }
 0x50a   : > { %v1290_v28 = vsel %vm806_vm3, %v1749_v21, 0 }
 0x50b   : > { %v2354_v41 = vpop.eup %2017  ;;  %v716_v42 = vrot.slane %v709_v35, %v2268_v34  ;;  %v724_v43 = vrot.slane %v1737_v36, %v2268_v34  ;;  %v732_v44 = vrot.slane %v725_v38, %v2268_v34  ;;  %v740_v45 = vrot.slane %v1738_v39, %v2268_v34  ;;  %v1751_v35 = vld [vmem:[%s2537_s3 + $0x8] sm:$0xf]  ;;  %v1753_v39 = vld [vmem:[%s2537_s3 + $0xc] sm:$0xf] }
 0x50c   : > { %v1021_v46 = vsel %vm802_vm4, %v2354_v41, 0.0  ;;  %v1339_v38 = vsel %vm806_vm3, %v1751_v35, 0 }
 0x50d   : > { %v741_v47 = vcombine.low %v716_v42, %v724_v43  ;;  %v742_v48 = vcombine.high %v716_v42, %v724_v43  ;;  %v757_v49 = vcombine.low %v732_v44, %v740_v45  ;;  %v758_v50 = vcombine.high %v732_v44, %v740_v45  ;;  %1022 = vadd.xlane.f32.xlu1 %v1021_v46 }
 0x50e   : > { %v1388_v44 = vsel %vm806_vm3, %v1753_v39, 0 }
 0x50f   : > { %v749_v51 = vrot.slane %v741_v47, %v2280_v40  ;;  %v756_v52 = vrot.slane %v742_v48, %v2280_v40  ;;  %v765_v53 = vrot.slane %v757_v49, %v2280_v40  ;;  %v772_v54 = vrot.slane %v758_v50, %v2280_v40 }
 0x511   : > { %v773_v55 = vcombine.low %v749_v51, %v765_v53  ;;  %v774_v56 = vcombine.high %v749_v51, %v765_v53  ;;  %v775_v57 = vcombine.low %v756_v52, %v772_v54  ;;  %v776_v34 = vcombine.high %v756_v52, %v772_v54  ;;  %v790_v52 = vld [vmem:[%s2233_s27] sm:$0xf]  ;;  %s335_s27 = sand.u32 1, %s2095_s10  }
 0x512   : > { %v791_v53 = vunpack.c.l.bf16 %v790_v52  ;;  %v1747_v54 = vld [vmem:[%s2538_s4] ss:$0 sm:$0xff]  ;;  %s1729_s29 = sshll.u32 %s335_s27, 2  ;;  %s1638_s28 = scalar_lea.sflag [#allocation6], %s335_s27 }
 0x513   : > { %v777_v58 = vpack.c.bf16 %v773_v55, %v773_v55  ;;  %v778_v59 = vpack.c.bf16 %v774_v56, %v774_v56  ;;  %v779_v60 = vpack.c.bf16 %v775_v57, %v775_v57  ;;  %v780_v61 = vpack.c.bf16 %v776_v34, %v776_v34  ;;  %s337_s20 = scalar_lea.vmem [#allocation5], %s1729_s29  ;;  %s2122_s29 = smov [#allocation5]  }
 0x514   : > { %v1235_v55 = vadd.f32 %v1747_v54, %v791_v53  ;;  %s1652_s23 = sshll.u32 %s337_s20, 4  ;;  %s2037_s15 = sshll.u32 %s2122_s29, 4  ;;  %s2489_s23 = int_to_ptr.vmem [resolvable:$true] %s1652_s23  ;;  %s2038_s15 = int_to_ptr.vmem [resolvable:$false] %s2037_s15 }
 0x515   : > { %781 = vst.msk [vmem:[#allocation4] sm:$0xf] %vm581_vm2, %v777_v58  ;;  %782 = vst.msk [vmem:[#allocation4 + $0x4] sm:$0xf] %vm581_vm2, %v778_v59  ;;  %s2033_s12 = scalar_lea.vmem %s2489_s23, 64  ;;  %s2039_s16 = scalar_lea.vmem %s2038_s15, 128 }
 0x516   : > { %783 = vst.msk [vmem:[#allocation4 + $0x8] sm:$0xf] %vm581_vm2, %v779_v60  ;;  %784 = vst.msk [vmem:[#allocation4 + $0xc] sm:$0xf] %vm581_vm2, %v780_v61  ;;  %p2034_p12 = scmp.ne.s32.totalorder %s2489_s23, %s2033_s12  ;;  %p2040_p1 = scmp.lt.s32.totalorder %s2489_s23, %s2038_s15 }
 0x517   : > { %p2041_p2 = scmp.lt.s32.totalorder %s2039_s16, %s2033_s12 }
 0x518   : > { %p2035_p13 = pnand %p2034_p12, %p2213_p4 }
 0x519   : > { %p2042_p3 = por %p2041_p2, %p2040_p1 }
 0x51a   : > { %p2036_p0 = pneg %p2035_p13 }
 0x51c   : > { %v1036_v62 = vld [vmem:[#allocation4] sm:$0xf]  ;;  %v1037_v63 = vld [vmem:[#allocation4 + $0x4] sm:$0xf]  ;;  %p2043_p5 = pnand %p2042_p3, %p2036_p0 }
 0x51d   : > { %v1044_v40 = vsel %vm806_vm3, %v1036_v62, 0  ;;  %v1090_v0 = vsel %vm806_vm3, %v1037_v63, 0  ;;  %v1039_v5 = vld [vmem:[#allocation4 + $0xc] sm:$0xf]  ;;  %v1038_v8 = vld [vmem:[#allocation4 + $0x8] sm:$0xf] }
 0x51e   : > { %1845 = vmatpush3.bf16.msra.mxu0 %v1044_v40  ;;  %1851 = vmatpush3.bf16.msra.mxu1 %v1090_v0  ;;  %v1182_v11 = vsel %vm806_vm3, %v1039_v5, 0  ;;  %v1136_v12 = vsel %vm806_vm3, %v1038_v8, 0  ;;  %v2001_v8 = vld [vmem:[%s2541_s7] sm:$0xff]  }
 0x51f   : > { %1862 = vmatprep.subr.bf16.mxu1 %v2113_v9  ;;  %1856 = vmatprep.subr.bf16.mxu0 %v2113_v9 }
 0x530   : > { %v1017_v1 = vpop.xlane.xlu1 %1016 }
 0x531   : > { %2019 = vrcp.f32 %v1017_v1  ;;  %v1014_v31 = vpop.xlane.xlu0 %1013  ;;  %v1999_v1 = vld [vmem:[%s2539_s5] sm:$0xff]  }
 0x532   : > { %2021 = vrcp.f32 %v1014_v31  ;;  %v2000_v31 = vld [vmem:[%s2539_s5 + $0x8] sm:$0xff]  }
 0x53b   : > { %v2020_v2 = vpop.eup %2019 }
 0x53c   : > { %v2022_v37 = vpop.eup %2021  ;;  %v1029_v3 = vmul.f32 %v2020_v2, %v2336_v32 }
 0x53d   : > { %v1028_v4 = vmul.f32 %v2022_v37, %v2334_v19 }
 0x53e   : > { %v1033_v6 = vpack.c.bf16 %v1029_v3, %v1029_v3 }
 0x53f   : > { %v1032_v10 = vpack.c.bf16 %v1028_v4, %v1028_v4 }
 0x540   : > { %1853 = vmatmul.mubr.msk.bf16.vlgmr.msra.gmra.mrb[8].mxu1 %vm802_vm4, %v1033_v6 }
 0x541   : > { %1863 = vmatpush3.bf16.msra.mxu1 %v1182_v11  ;;  %1847 = vmatmul.mubr.msk.bf16.vlgmr.msra.gmra.mrb[12].mxu0 %vm802_vm4, %v1032_v10  ;;  %v2002_v10 = vld [vmem:[%s2541_s7 + $0x8] sm:$0xff]   ;;  %v2003_v11 = vld [vmem:[%s2541_s7 + $0x10] sm:$0xff]  }
 0x542   : > { %1857 = vmatpush3.bf16.msra.mxu0 %v1136_v12  ;;  %1858 = vmatprep.mubr.msk.bf16.mxu0 %vm2114_vm1, %v2113_v9  ;;  %v2004_v12 = vld [vmem:[%s2541_s7 + $0x18] sm:$0xff]  }
 0x543   : > { %1864 = vmatprep.mubr.msk.bf16.mxu1 %vm2114_vm1, %v2113_v9  ;;  %1868 = vmatprep.subr.bf16.mxu0 %v2113_v9 }
 0x544   : > { %1892 = vmatprep.subr.bf16.mxu1 %v2113_v9 }
 0x565   : > { %v1020_v19 = vpop.xlane.xlu1 %1019 }
 0x566   : > { %2023 = vrcp.f32 %v1020_v19  ;;  %v2005_v19 = vld [vmem:[%s2541_s7 + $0x20] sm:$0xff]  }
 0x570   : > { %v2024_v32 = vpop.eup %2023 }
 0x571   : > { %v1030_v13 = vmul.f32 %v2024_v32, %v2342_v7  ;;  %v2006_v32 = vld [vmem:[%s2541_s7 + $0x28] sm:$0xff]  }
 0x573   : > { %v1034_v14 = vpack.c.bf16 %v1030_v13, %v1030_v13  ;;  %v2007_v13 = vld [vmem:[%s2541_s7 + $0x30] sm:$0xff]  }
 0x575   : > { %1859 = vmatmul.mubr.msk.bf16.vlgmr.msra.gmra.mrb[16].mxu0 %vm802_vm4, %v1034_v14  ;;  %v2008_v14 = vld [vmem:[%s2541_s7 + $0x38] sm:$0xff]  }
 0x576   : > { %1870 = vmatprep.mubr.msk.bf16.mxu0 %vm2114_vm1, %v2113_v9  ;;  %1869 = vmatpush3.bf16.msra.mxu0 %v1241_v16 }
 0x577   : > { %1874 = vmatprep.subr.bf16.mxu0 %v2113_v9 }
 0x59a   : > { %v1023_v17 = vpop.xlane.xlu1 %1022 }
 0x59b   : > { %2025 = vrcp.f32 %v1023_v17 }
 0x5a5   : > { %v2026_v18 = vpop.eup %2025 }
 0x5a6   : > { %v1031_v7 = vmul.f32 %v2026_v18, %v2354_v41 }
 0x5a8   : > { %v1035_v20 = vpack.c.bf16 %v1031_v7, %v1031_v7 }
 0x5aa   : > { %1865 = vmatmul.mubr.msk.bf16.vlgmr.msra.gmra.mrb[12].mxu1 %vm802_vm4, %v1035_v20 }
 0x5ab   : > { %1896 = vmatprep.mubr.msk.bf16.mxu1 %vm2114_vm1, %v2113_v9  ;;  %1893 = vmatpush3.bf16.msra.mxu1 %v1999_v1 }
 0x5ac   : > { %1894 = vmatprep.subr.bf16.mxu1 %v2113_v9 }
 0x5af   : > { %1895 = vmatpush3.bf16.msra.mxu1 %v2000_v31 }
 0x5b0   : > { %1900 = vmatprep.subr.bf16.mxu1 %v2113_v9 }
 0x613   : > { %v1126_v22 = vpop.f32.mrb[8].mxu1 }
 0x614   : > { %v1080_v23 = vpop.f32.mrb[12].mxu0  ;;  %v1854_v24 = vpop.f32.mrb[9].mxu1  ;;  %v1225_v36 = vpack.c.bf16 %v1126_v22, %v1126_v22 }
 0x615   : > { %v1224_v25 = vpack.c.bf16 %v1080_v23, %v1080_v23  ;;  %v1848_v26 = vpop.f32.mrb[13].mxu0  ;;  %v1129_v27 = vpop.f32.mrb[10].mxu1 }
 0x616   : > { %v1083_v29 = vpop.f32.mrb[14].mxu0  ;;  %v1855_v30 = vpop.f32.mrb[11].mxu1  ;;  %v1760_v27 = vld [vmem:[%s2542_s8] ss:$0 sm:$0xff] }
 0x617   : > { %v1849_v33 = vpop.f32.mrb[15].mxu0  ;;  %1871 = vmatmul.mubr.msk.bf16.vlgmr.msra.gmra.mrb[20].mxu0 %vm802_vm4, %v1224_v25 }
 0x618   : > { %1875 = vmatpush3.bf16.msra.mxu0 %v1290_v28  ;;  %1876 = vmatprep.mubr.msk.bf16.mxu0 %vm2114_vm1, %v2113_v9 }
 0x619   : > { %1880 = vmatprep.subr.bf16.mxu0 %v2113_v9 }
 0x623   : > { %1877 = vmatmul.mubr.msk.bf16.vlgmr.msra.gmra.mrb[20].mxu0 %vm802_vm4, %v1225_v36 }
 0x624   : > { %1881 = vmatpush3.bf16.msra.mxu0 %v1339_v38  ;;  %1882 = vmatprep.mubr.msk.bf16.mxu0 %vm2114_vm1, %v2113_v9 }
 0x625   : > { %1886 = vmatprep.subr.bf16.mxu0 %v2113_v9 }
 0x648   : > { %v1172_v41 = vpop.f32.mrb[16].mxu0 }
 0x649   : > { %v1226_v42 = vpack.c.bf16 %v1172_v41, %v1172_v41  ;;  %v1860_v43 = vpop.f32.mrb[17].mxu0 }
 0x64a   : > { %v1175_v45 = vpop.f32.mrb[18].mxu0 }
 0x64b   : > { %v1861_v46 = vpop.f32.mrb[19].mxu0  ;;  %1883 = vmatmul.mubr.msk.bf16.vlgmr.msra.gmra.mrb[20].mxu0 %vm802_vm4, %v1226_v42 }
 0x64c   : > { %1887 = vmatpush3.bf16.msra.mxu0 %v1388_v44  ;;  %1888 = vmatprep.mubr.msk.bf16.mxu0 %vm2114_vm1, %v2113_v9 }
 0x67d   : > { %v1218_v47 = vpop.f32.mrb[12].mxu1 }
 0x67e   : > { %v1227_v48 = vpack.c.bf16 %v1218_v47, %v1218_v47  ;;  %v1866_v49 = vpop.f32.mrb[13].mxu1 }
 0x67f   : > { %v1221_v50 = vpop.f32.mrb[14].mxu1 }
 0x680   : > { %v1867_v51 = vpop.f32.mrb[15].mxu1  ;;  %1889 = vmatmul.mubr.msk.bf16.vlgmr.msra.gmra.mrb[20].mxu0 %vm802_vm4, %v1227_v48 }
 0x753   : > { %v1424_v56 = vpop.f32.mrb[20].mxu0 }
 0x754   : > { %v2427_v57 = vadd.f32 %v1424_v56, %v1235_v55  ;;  %v1890_v34 = vpop.f32.mrb[21].mxu0 }
 0x755   : > { %v1427_v58 = vpop.f32.mrb[22].mxu0 }
 0x756   : > { %v1891_v59 = vpop.f32.mrb[23].mxu0  ;;  %v1432_v60 = vsel %vm349_vm0, %v2427_v57, 0.0 }
 0x757   : > { %1433 = vadd.xlane.f32.xlu1 %v1432_v60 }
 0x7e4   : > { %v1434_v61 = vpop.xlane.xlu1 %1433 }
 0x7e5   : > { %v1436_v62 = vmul.f32 0.03125, %v1434_v61 }
 0x7e7   : > { %v1437_v63 = vsub.f32 %v2427_v57, %v1436_v62 }
 0x7e9   : > { %v1438_v40 = vmul.f32 %v1437_v63, %v1437_v63 }
 0x7eb   : > { %v1439_v0 = vsel %vm349_vm0, %v1438_v40, 0.0 }
 0x7ec   : > { %1440 = vadd.xlane.f32.xlu1 %v1439_v0 }
 0x879   : > { %v1441_v2 = vpop.xlane.xlu1 %1440 }
 0x87a   : > { %v1442_v37 = vmul.f32 0.03125, %v1441_v2 }
 0x87c   : > { %v1443_v3 = vadd.f32 1e-05, %v1442_v37 }
 0x87e   : > { %2027 = vrsqrt.f32 %v1443_v3 }
 0x888   : > { %v2028_v4 = vpop.eup %2027 }
 0x889   : > { %v1445_v5 = vmul.f32 %v2028_v4, %v1437_v63 }
 0x88b   : > { %v1446_v6 = vpack.c.bf16 %v1445_v5, %v1445_v5 }
 0x88d   : > { %1897 = vmatmul.mubr.msk.bf16.vlgmr.msra.gmra.mrb[16].mxu1 %vm349_vm0, %v1446_v6 }
 0x88e   : > { %1916 = vmatprep.mubr.msk.bf16.mxu1 %vm2114_vm1, %v2113_v9  ;;  %1901 = vmatpush3.bf16.msra.mxu1 %v2001_v8 }
 0x88f   : > { %1902 = vmatprep.subr.bf16.mxu1 %v2113_v9 }
 0x892   : > { %1903 = vmatpush3.bf16.msra.mxu1 %v2002_v10 }
 0x893   : > { %1904 = vmatprep.subr.bf16.mxu1 %v2113_v9 }
 0x896   : > { %1905 = vmatpush3.bf16.msra.mxu1 %v2003_v11 }
 0x897   : > { %1906 = vmatprep.subr.bf16.mxu1 %v2113_v9 }
 0x89a   : > { %1907 = vmatpush3.bf16.msra.mxu1 %v2004_v12 }
 0x89b   : > { %1908 = vmatprep.subr.bf16.mxu1 %v2113_v9 }
 0x89e   : > { %1909 = vmatpush3.bf16.msra.mxu1 %v2005_v19 }
 0x89f   : > { %1910 = vmatprep.subr.bf16.mxu1 %v2113_v9 }
 0x8a2   : > { %1911 = vmatpush3.bf16.msra.mxu1 %v2006_v32 }
 0x8a3   : > { %1912 = vmatprep.subr.bf16.mxu1 %v2113_v9 }
 0x8a6   : > { %1913 = vmatpush3.bf16.msra.mxu1 %v2007_v13 }
 0x8a7   : > { %1914 = vmatprep.subr.bf16.mxu1 %v2113_v9 }
 0x8aa   : > { %1915 = vmatpush3.bf16.msra.mxu1 %v2008_v14 }
 0x960   : > { %v1507_v16 = vpop.f32.mrb[16].mxu1 }
 0x961   : > { %v1508_v17 = vadd.f32 %v1755_v15, %v1507_v16  ;;  %v1898_v18 = vpop.f32.mrb[17].mxu1 }
 0x962   : > { %v1510_v7 = vpop.f32.mrb[18].mxu1 }
 0x963   : > { %v1759_v20 = vmul.f32 -1.702, %v1508_v17  ;;  %v1899_v21 = vpop.f32.mrb[19].mxu1 }
 0x965   : > { %v1515_v22 = vmul.f32 1.442695, %v1759_v20 }
 0x967   : > { %2029 = vpow2.f32 %v1515_v22 }
 0x971   : > { %v2030_v9 = vpop.eup %2029 }
 0x972   : > { %v1517_v23 = vadd.f32 1.0, %v2030_v9 }
 0x974   : > { %2031 = vrcp.f32 %v1517_v23 }
 0x97e   : > { %v2032_v24 = vpop.eup %2031 }
 0x97f   : > { %v1520_v25 = vmul.f32 %v2032_v24, %v1508_v17 }
 0x981   : > { %v1521_v26 = vpack.c.bf16 %v1520_v25, %v1520_v25 }
 0x983   : > { %1917 = vmatmul.mubr.bf16.vlgmr.msra.gmra.mrb[20].mxu1 %v1521_v26 }
 0xa56   : > { %v1627_v28 = vpop.f32.mrb[20].mxu1 }
 0xa57   : > { %v1628_v29 = vadd.f32 %v1760_v27, %v1627_v28  ;;  %v1918_v30 = vpop.f32.mrb[21].mxu1 }
 0xa58   : > { %v1630_v33 = vpop.f32.mrb[22].mxu1 }
 0xa59   : > { %v1633_v35 = vadd.f32 %v2427_v57, %v1628_v29  ;;  %v1919_v36 = vpop.f32.mrb[23].mxu1 }
 0xa5b   : > { %v1634_v38 = vpack.c.bf16 %v1633_v35, %v1633_v35 }
 0xa5d   : > { %1636 = vst.msk [vmem:[%s337_s20] sm:$0xf] %vm1635_vm5, %v1634_v38 }
 0xa5e   : > { %2046 = shalt.err (!%p2043_p5)
}
 0xa5f   : > { %s2047_s27 = scalar_lea.hbm %s2487_s26, 64  ;;  %s2051_s24 = scalar_lea.hbm %s2543_s9, 128 }
 0xa60   : > { %p2048_p6 = scmp.ne.s32.totalorder %s2487_s26, %s2047_s27  ;;  %p2052_p10 = scmp.lt.u32.totalorder %s2487_s26, %s2543_s9 }
 0xa61   : > { %p2053_p11 = scmp.lt.u32.totalorder %s2051_s24, %s2047_s27  ;;  %p2055_p13 = scmp.lt.u32.totalorder %s2047_s27, %s2487_s26 }
 0xa62   : > { %p2049_p7 = pnand %p2048_p6, %p2213_p4 }
 0xa63   : > { %p2054_p12 = por %p2053_p11, %p2052_p10 }
 0xa64   : > { %p2050_p9 = pneg %p2049_p7 }
 0xa65   : > { %p2056_p0 = por %p2055_p13, %p2054_p12 }
 0xa67   : > { %p2057_p1 = pnand %p2056_p0, %p2050_p9 }
 0xa69   : > { %2060 = shalt.err (!%p2057_p1)
}
 0xa6a   : > { %1933 = dma.vmem_to_hbm [thread:$0]  (%p2213_p4), %s2489_s23, 64, %s2487_s26, %s1638_s28  }
 0xa6b PF: > { %p1939_p2 = scmp.ge.s32.totalorder %s2111_s14, 2  ;;  %s1664_s12 = sand.u32 1, %s2091_s30  }
 0xa6c   : > { %s1665_s15 = scalar_lea.sflag [#allocation6], %s1664_s12 }
 0xa6d   : > { %p1936_p3 = pnand %p1939_p2, %p2220_p8 }
 0xa6f   : > { %2086 = dma.done.wait (!%p1936_p3), %s1665_s15, 64  }
 0xa70   : > { %2088 = vsyncadd (!%p1936_p3), %s1665_s15, 4294967232  ;;  %s22_s14 = sadd.s32 1, %s2111_s14   ;;  %s2546_s30 = smov %s2095_s10 }
 0xa71   : > { %p19_p5 = scmp.ge.s32.totalorder %s22_s14, 4   ;;  %s2547_s10 = smov %s2099_s11 }
 0xa72   : > { %s2548_s11 = smov %s2226_s22  ;;  %s2549_s12 = smov %s2107_s13 }
 0xa73   : > { %s2550_s13 = smov %s2552_s17  ;;  %21 = sbr.rel (!%p19_p5) target bundleno = 4 (0x4), region = 100 }
 0xa7a   :  { %1670 = vsyncpa [#allocation6], 1 }
 0xa7b   :  { %1672 = vsyncpa [#allocation6 + $0x1], 1 }

// kernel: tpu_custom_call.1
= control target key start
LH: loop header
LB: loop body
LE: loop exit
PB: predicated region body
PF: predicated region fallthrough
CT: control target
= control target key end

     0   :  { %14 = vsyncpa [#allocation6], 0  ;;  %s2534_s0 = inlined_call_operand.vmem [shape: bf16[2,8,32], index: 0, kind: input, shape index: {}]   ;;  %s2535_s1 = inlined_call_operand.vmem [shape: bf16[32,96], index: 1, kind: input, shape index: {}]   ;;  %s2536_s2 = inlined_call_operand.vmem [shape: f32[1,96], index: 2, kind: input, shape index: {}]   ;;  %s2537_s3 = inlined_call_operand.vmem [shape: bf16[4,8,32], index: 3, kind: input, shape index: {}]   ;;  %s2538_s4 = inlined_call_operand.vmem [shape: f32[1,32], index: 4, kind: input, shape index: {}]   ;;  %s2539_s5 = inlined_call_operand.vmem [shape: bf16[32,128], index: 5, kind: input, shape index: {}]   ;;  %s2540_s6 = inlined_call_operand.vmem [shape: f32[1,128], index: 6, kind: input, shape index: {}]   ;;  %s2541_s7 = inlined_call_operand.vmem [shape: bf16[128,32], index: 7, kind: input, shape index: {}]   ;;  %s2542_s8 = inlined_call_operand.vmem [shape: f32[1,32], index: 8, kind: input, shape index: {}]   ;;  %s2543_s9 = inlined_call_operand.hbm [shape: bf16[2,8,32], index: 9, kind: output, shape index: {}]  }
   0x1   :  { %16 = vsyncpa [#allocation6 + $0x1], 0  ;;  %s2173_s30 = smov 0   ;;  %s2175_s10 = smov 0  }
   0x2   :  { %s2177_s11 = smov 0   ;;  %s2179_s12 = smov 0  }
   0x3   :  { %s2181_s13 = smov 0   ;;  %s2183_s14 = smov 0  }
   0x4 LB: > { %s1724_s15 = sadd.s32 4294967295, %s2111_s14   ;;  %s1725_s16 = sadd.s32 4294967294, %s2111_s14   ;;  %s2111_s14 = sphi %s2183_s14, %s22_s14   ;;  %s2107_s13 = sphi %s2181_s13, %s2550_s13   ;;  %s2103_s12 = sphi %s2179_s12, %s2549_s12   ;;  %s2099_s11 = sphi %s2177_s11, %s2548_s11   ;;  %s2095_s10 = sphi %s2175_s10, %s2547_s10   ;;  %s2091_s30 = sphi %s2173_s30, %s2546_s30  }
   0x5   : > { %s34_s17 = sadd.s32 1, %s2107_s13  ;;  %s237_s18 = sadd.s32 1, %s2099_s11 }
   0x6   : > { %p36_p0 = scmp.ge.s32.totalorder %s34_s17, 2  ;;  %p247_p1 = scmp.ne.s32.totalorder %s2099_s11, %s2095_s10 }
   0x7   : > { %p248_p2 = scmp.eq.s32.totalorder %s1724_s15, 1  ;;  %p253_p3 = scmp.ne.s32.totalorder %s2095_s10, %s2091_s30 }
   0x8   : > { %s2552_s17 = smov (%p36_p0, %s34_s17), 0  ;;  %p254_p5 = scmp.eq.s32.totalorder %s1725_s16, 1 }
   0x9   : > { %p2213_p4 = por %p248_p2, %p247_p1  ;;  %s232_s20 = ssub.s32 %s2107_s13, %s2552_s17 }
   0xa   : > { %p1728_p6 = scmp.ge.s32.totalorder %s2111_s14, 1  ;;  %p235_p7 = scmp.eq.s32.totalorder %s232_s20, 0 }
   0xb   : > { %p2220_p8 = por %p254_p5, %p253_p3  ;;  %p303_p9 = scmp.lt.s32.totalorder %s2111_s14, 3 }
   0xc   : > { %s2226_s22 = scalar_select %p235_p7, %s2099_s11, %s237_s18  }
   0xd   : > { %p304_p10 = pnand %p1728_p6, %p303_p9 }
   0xe   : > { %p338_p11 = scmp.lt.s32.totalorder (!%p304_p10), %s2103_s12, 1  ;;  %vm349_vm0 = vcmask (!%p304_p10), 261120   ;;  %v1997_v8 = vld [vmem:[%s2535_s1] sm:$0xff] (!%p304_p10)   ;;  %v2113_v9 = vmov (!%p304_p10), 0.0   ;;  %vm2114_vm1 = vmmov (!%p304_p10), 0   ;;  %v1998_v10 = vld [vmem:[%s2535_s1 + $0x8] sm:$0xff] (!%p304_p10)   ;;  %v446_v25 = vlaneseq (!%p304_p10) }
   0xf   : > { %307 = sbr.rel (%p304_p10) target bundleno = 2667 (0xa6b), region = 56  ;;  %1812 = vmatprep.subr.bf16.mxu0 (!%p304_p10), %v2113_v9  ;;  %1816 = vmatprep.mubr.msk.bf16.mxu0 (!%p304_p10), %vm2114_vm1, %v2113_v9  ;;  %v1731_v17 = vld [vmem:[%s2536_s2] ss:$0 sm:$0xff] (!%p304_p10)  ;;  %s2117_s25 = smov (!%p304_p10), 120   ;;  %v2119_v23 = vmov (!%p304_p10), 1983009808  }
  0x10   : > { %1813 = vmatpush3.bf16.msra.mxu0 (!%p304_p10), %v1997_v8  ;;  %1826 = vmatprep.subr.bf16.mxu1 (!%p304_p10), %v2113_v9  ;;  %s2118_s26 = smov (!%p304_p10), 104   ;;  %v444_v24 = vunpack.c.l.s4 (!%p304_p10), %v2119_v23  ;;  %v2120_v27 = vmov (!%p304_p10), 1934713408   ;;  %v447_v30 = vshrl.u32 (!%p304_p10), %v446_v25, 7  ;;  %vm581_vm2 = vcmask (!%p304_p10), 60416   ;;  %s2121_s28 = smov (!%p304_p10), 64  }
  0x11   : > { %1814 = vmatprep.subr.bf16.mxu0 (!%p304_p10), %v2113_v9  ;;  %1828 = vmatprep.mubr.msk.bf16.mxu1 (!%p304_p10), %vm2114_vm1, %v2113_v9  ;;  %v476_v28 = vunpack.c.l.s4 (!%p304_p10), %v2120_v27  ;;  %vm806_vm3 = vcmask (!%p304_p10), 1043456   ;;  %vm802_vm4 = vcmask (!%p304_p10), 64512   ;;  %s1770_s18 = sshll.u32 (!%p304_p10), %s2103_s12, 6  ;;  %vm1635_vm5 = vcmask (!%p304_p10), 257024  }
  0x12   : > { %v445_v29 = vunpack.c.0.s8 (!%p304_p10), %v444_v24 }
  0x13   : > { %v477_v33 = vunpack.c.0.s8 (!%p304_p10), %v476_v28 }
  0x14   : > { %1815 = vmatpush3.bf16.msra.mxu0 (!%p304_p10), %v1998_v10  ;;  %v2268_v34 = vsub.s32 (!%p304_p10), %v445_v29, %v447_v30 }
  0x15   : > { %1820 = vmatprep.subr.bf16.mxu0 (!%p304_p10), %v2113_v9  ;;  %v2280_v40 = vsub.s32 (!%p304_p10), %v477_v33, %v447_v30 }
  0x16   : > { %s339_s23 = scalar_select %p338_p11, %s2103_s12, 1 }
  0x18   : > { %s1730_s24 = sshll.u32 %s339_s23, 2  ;;  %s2115_s23 = smov 112  }
  0x19   : > { %s2233_s27 = scalar_lea.vmem %s2534_s0, %s1730_s24  ;;  %s2116_s24 = smov 96  }
  0x1a   : > { %v347_v0 = vld [vmem:[%s2233_s27] sm:$0xf] }
  0x1b   : > { %v348_v1 = vunpack.c.l.bf16 %v347_v0 }
  0x1d   : > { %v350_v2 = vsel %vm349_vm0, %v348_v1, 0.0 }
  0x1e   : > { %351 = vadd.xlane.f32.xlu0 %v350_v2 }
  0xab   : > { %v352_v3 = vpop.xlane.xlu0 %351 }
  0xac   : > { %v354_v4 = vmul.f32 0.03125, %v352_v3 }
  0xae   : > { %v355_v5 = vsub.f32 %v348_v1, %v354_v4 }
  0xb0   : > { %v356_v6 = vmul.f32 %v355_v5, %v355_v5 }
  0xb2   : > { %v357_v7 = vsel %vm349_vm0, %v356_v6, 0.0 }
  0xb3   : > { %358 = vadd.xlane.f32.xlu0 %v357_v7 }
 0x140   : > { %v359_v11 = vpop.xlane.xlu0 %358 }
 0x141   : > { %v360_v12 = vmul.f32 0.03125, %v359_v11 }
 0x143   : > { %v361_v13 = vadd.f32 1e-05, %v360_v12 }
 0x145   : > { %2009 = vrsqrt.f32 %v361_v13 }
 0x14f   : > { %v2010_v14 = vpop.eup %2009 }
 0x150   : > { %v363_v15 = vmul.f32 %v2010_v14, %v355_v5 }
 0x152   : > { %v364_v16 = vpack.c.bf16 %v363_v15, %v363_v15 }
 0x154   : > { %1817 = vmatmul.mubr.msk.bf16.vlgmr.msra.gmra.mrb[0].mxu0 %vm349_vm0, %v364_v16 }
 0x155   : > { %1822 = vmatprep.mubr.msk.bf16.mxu0 %vm2114_vm1, %v2113_v9 }
 0x227   : > { %v425_v18 = vpop.f32.mrb[0].mxu0 }
 0x228   : > { %v2258_v19 = vadd.f32 %v1731_v17, %v425_v18  ;;  %v1818_v20 = vpop.f32.mrb[1].mxu0 }
 0x229   : > { %v428_v21 = vpop.f32.mrb[2].mxu0 }
 0x22a   : > { %435 = vrot.lane.b32.xlu0 %v2258_v19, %s2115_s23  ;;  %586 = vrot.lane.b32.xlu1 %v2258_v19, %s2116_s24  ;;  %v1819_v22 = vpop.f32.mrb[3].mxu0 }
 0x22e   : > { %432 = vrot.lane.b32.xlu1 %v2258_v19, %s2117_s25 }
 0x232   : > { %438 = vrot.lane.b32.xlu1 %v2258_v19, %s2118_s26  ;;  %s2487_s26 = scalar_lea.hbm %s2543_s9, %s1770_s18 }
 0x29c   : > { %v587_v26 = vpop.permute.xlu1 %586  ;;  %v2264_v31 = vpop.permute.xlu0 %435 }
 0x29d   : > { %589 = vxpose.xlu1.b32.start.end [1/1] (short) (narrow) %v587_v26, 32  ;;  %v441_v35 = vcombine.low %v2258_v19, %v2264_v31  ;;  %v442_v36 = vcombine.high %v2258_v19, %v2264_v31 }
 0x29f   : > { %v449_v41 = vrot.slane %v441_v35, %v2268_v34  ;;  %v456_v42 = vrot.slane %v442_v36, %v2268_v34 }
 0x2a0   : > { %v2266_v32 = vpop.permute.xlu1 %432 }
 0x2a4   : > { %v2274_v37 = vpop.permute.xlu1 %438 }
 0x2a5   : > { %v457_v38 = vcombine.low %v2266_v32, %v2274_v37  ;;  %v458_v39 = vcombine.high %v2266_v32, %v2274_v37 }
 0x2a7   : > { %v465_v43 = vrot.slane %v457_v38, %v2268_v34  ;;  %v472_v44 = vrot.slane %v458_v39, %v2268_v34 }
 0x2a9   : > { %v473_v45 = vcombine.low %v449_v41, %v465_v43  ;;  %v474_v46 = vcombine.high %v449_v41, %v465_v43  ;;  %v489_v47 = vcombine.low %v456_v42, %v472_v44  ;;  %v490_v48 = vcombine.high %v456_v42, %v472_v44 }
 0x2ab   : > { %v481_v49 = vrot.slane %v473_v45, %v2280_v40  ;;  %v488_v50 = vrot.slane %v474_v46, %v2280_v40  ;;  %v497_v51 = vrot.slane %v489_v47, %v2280_v40  ;;  %v504_v52 = vrot.slane %v490_v48, %v2280_v40 }
 0x2ad   : > { %v509_v53 = vcombine.low %v481_v49, %v488_v50  ;;  %v1735_v54 = vcombine.high %v481_v49, %v488_v50  ;;  %v525_v55 = vcombine.low %v497_v51, %v504_v52  ;;  %v1736_v56 = vcombine.high %v497_v51, %v504_v52 }
 0x2af   : > { %v516_v57 = vrot.slane %v509_v53, %v2268_v34  ;;  %v524_v58 = vrot.slane %v1735_v54, %v2268_v34  ;;  %v532_v59 = vrot.slane %v525_v55, %v2268_v34  ;;  %v540_v60 = vrot.slane %v1736_v56, %v2268_v34 }
 0x2b1   : > { %v541_v61 = vcombine.low %v516_v57, %v524_v58  ;;  %v542_v62 = vcombine.high %v516_v57, %v524_v58  ;;  %v557_v63 = vcombine.low %v532_v59, %v540_v60  ;;  %v558_v0 = vcombine.high %v532_v59, %v540_v60 }
 0x2b3   : > { %v549_v1 = vrot.slane %v541_v61, %v2280_v40  ;;  %v556_v2 = vrot.slane %v542_v62, %v2280_v40  ;;  %v565_v3 = vrot.slane %v557_v63, %v2280_v40  ;;  %v572_v4 = vrot.slane %v558_v0, %v2280_v40 }
 0x2b5   : > { %v573_v5 = vcombine.low %v549_v1, %v565_v3  ;;  %v574_v6 = vcombine.high %v549_v1, %v565_v3  ;;  %v575_v7 = vcombine.low %v556_v2, %v572_v4  ;;  %v576_v8 = vcombine.high %v556_v2, %v572_v4 }
 0x2b7   : > { %v577_v10 = vpack.c.bf16 %v573_v5, %v573_v5  ;;  %v578_v11 = vpack.c.bf16 %v574_v6, %v574_v6  ;;  %v579_v12 = vpack.c.bf16 %v575_v7, %v575_v7  ;;  %v580_v13 = vpack.c.bf16 %v576_v8, %v576_v8 }
 0x2b9   : > { %582 = vst.msk [vmem:[#allocation2] sm:$0xf] %vm581_vm2, %v577_v10  ;;  %583 = vst.msk [vmem:[#allocation2 + $0x4] sm:$0xf] %vm581_vm2, %v578_v11 }
 0x2ba   : > { %584 = vst.msk [vmem:[#allocation2 + $0x8] sm:$0xf] %vm581_vm2, %v579_v12  ;;  %585 = vst.msk [vmem:[#allocation2 + $0xc] sm:$0xf] %vm581_vm2, %v580_v13 }
 0x2c0   : > { %v794_v25 = vld [vmem:[#allocation2] sm:$0xf]  ;;  %v795_v28 = vld [vmem:[#allocation2 + $0x4] sm:$0xf] }
 0x2c1   : > { %v796_v33 = vld [vmem:[#allocation2 + $0x8] sm:$0xf]  ;;  %v797_v38 = vld [vmem:[#allocation2 + $0xc] sm:$0xf] }
 0x31d   : > { %v605_v14 = vpop.trf.xlu1 }
 0x31e   : > { %v621_v15 = vpack.c.bf16 %v605_v14, %v605_v14 }
 0x320   : > { %625 = vst.msk [vmem:[#allocation3] sm:$0xf] %vm581_vm2, %v621_v15 }
 0x321   : > { %v606_v16 = vpop.trf.xlu1 }
 0x322   : > { %v622_v17 = vpack.c.bf16 %v606_v16, %v606_v16 }
 0x324   : > { %626 = vst.msk [vmem:[#allocation3 + $0x4] sm:$0xf] %vm581_vm2, %v622_v17 }
 0x325   : > { %v607_v18 = vpop.trf.xlu1 }
 0x326   : > { %v623_v20 = vpack.c.bf16 %v607_v18, %v607_v18 }
 0x327   : > { %v798_v21 = vld [vmem:[#allocation3] sm:$0xf] }
 0x328   : > { %627 = vst.msk [vmem:[#allocation3 + $0x8] sm:$0xf] %vm581_vm2, %v623_v20  ;;  %v808_v22 = vsel %vm806_vm3, %v798_v21, 0 }
 0x329   : > { %1821 = vmatpush3.bf16.msra.mxu0 %v808_v22  ;;  %v608_v23 = vpop.trf.xlu1 }
 0x32a   : > { %v624_v24 = vpack.c.bf16 %v608_v23, %v608_v23  ;;  %1832 = vmatprep.subr.bf16.mxu0 %v2113_v9 }
 0x32b   : > { %v799_v26 = vld [vmem:[#allocation3 + $0x4] sm:$0xf] }
 0x32c   : > { %628 = vst.msk [vmem:[#allocation3 + $0xc] sm:$0xf] %vm581_vm2, %v624_v24  ;;  %1823 = vmatmul.mubr.msk.bf16.vlgmr.msra.gmra.mrb[4].mxu0 %vm802_vm4, %v794_v25  ;;  %v854_v27 = vsel %vm806_vm3, %v799_v26, 0 }
 0x32d   : > { %1827 = vmatpush3.bf16.msra.mxu1 %v854_v27  ;;  %1834 = vmatprep.mubr.msk.bf16.mxu0 %vm2114_vm1, %v2113_v9 }
 0x32e   : > { %1838 = vmatprep.subr.bf16.mxu1 %v2113_v9 }
 0x32f   : > { %v800_v29 = vld [vmem:[#allocation3 + $0x8] sm:$0xf] }
 0x330   : > { %1829 = vmatmul.mubr.msk.bf16.vlgmr.msra.gmra.mrb[0].mxu1 %vm802_vm4, %v795_v28  ;;  %v900_v30 = vsel %vm806_vm3, %v800_v29, 0 }
 0x331   : > { %1833 = vmatpush3.bf16.msra.mxu0 %v900_v30  ;;  %1840 = vmatprep.mubr.msk.bf16.mxu1 %vm2114_vm1, %v2113_v9 }
 0x332   : > { %1844 = vmatprep.subr.bf16.mxu0 %v2113_v9 }
 0x333   : > { %v801_v35 = vld [vmem:[#allocation3 + $0xc] sm:$0xf] }
 0x334   : > { %1835 = vmatmul.mubr.msk.bf16.vlgmr.msra.gmra.mrb[8].mxu0 %vm802_vm4, %v796_v33  ;;  %v946_v36 = vsel %vm806_vm3, %v801_v35, 0 }
 0x335   : > { %1839 = vmatpush3.bf16.msra.mxu1 %v946_v36  ;;  %1846 = vmatprep.mubr.msk.bf16.mxu0 %vm2114_vm1, %v2113_v9 }
 0x336   : > { %1850 = vmatprep.subr.bf16.mxu1 %v2113_v9 }
 0x338   : > { %1841 = vmatmul.mubr.msk.bf16.vlgmr.msra.gmra.mrb[4].mxu1 %vm802_vm4, %v797_v38 }
 0x339   : > { %1852 = vmatprep.mubr.msk.bf16.mxu1 %vm2114_vm1, %v2113_v9 }
 0x3ff   : > { %v844_v39 = vpop.f32.mrb[4].mxu0 }
 0x400   : > { %v1824_v41 = vpop.f32.mrb[5].mxu0  ;;  %v988_v42 = vsel %vm802_vm4, %v844_v39, -inf }
 0x401   : > { %989 = vmax.xlane.f32.xlu0 %v988_v42  ;;  %v847_v43 = vpop.f32.mrb[6].mxu0 }
 0x402   : > { %v1825_v44 = vpop.f32.mrb[7].mxu0 }
 0x403   : > { %v890_v45 = vpop.f32.mrb[0].mxu1 }
 0x404   : > { %v1830_v46 = vpop.f32.mrb[1].mxu1  ;;  %v991_v47 = vsel %vm802_vm4, %v890_v45, -inf }
 0x405   : > { %992 = vmax.xlane.f32.xlu1 %v991_v47  ;;  %v893_v48 = vpop.f32.mrb[2].mxu1 }
 0x406   : > { %v1831_v49 = vpop.f32.mrb[3].mxu1 }
 0x407   : > { %v936_v50 = vpop.f32.mrb[8].mxu0 }
 0x408   : > { %v1836_v51 = vpop.f32.mrb[9].mxu0  ;;  %v994_v58 = vsel %vm802_vm4, %v936_v50, -inf }
 0x409   : > { %v939_v52 = vpop.f32.mrb[10].mxu0 }
 0x40a   : > { %v1837_v53 = vpop.f32.mrb[11].mxu0 }
 0x40b   : > { %v982_v54 = vpop.f32.mrb[4].mxu1 }
 0x40c   : > { %v1842_v55 = vpop.f32.mrb[5].mxu1  ;;  %v997_v59 = vsel %vm802_vm4, %v982_v54, -inf }
 0x40d   : > { %v985_v56 = vpop.f32.mrb[6].mxu1 }
 0x40e   : > { %v1843_v57 = vpop.f32.mrb[7].mxu1 }
 0x417   : > { %629 = vrot.lane.b32.xlu0 %v2258_v19, %s2121_s28 }
 0x41b   : > { %631 = vrot.lane.b32.xlu0 %v2266_v32, %s2121_s28 }
 0x43a   : > { %995 = vmax.xlane.f32.xlu0 %v994_v58 }
 0x450   : > { %633 = vrot.lane.b32.xlu0 %v2264_v31, %s2121_s28 }
 0x46f   : > { %998 = vmax.xlane.f32.xlu0 %v997_v59 }
 0x485   : > { %635 = vrot.lane.b32.xlu0 %v2274_v37, %s2121_s28 }
 0x48e   : > { %v990_v60 = vpop.xlane.xlu0 %989 }
 0x48f   : > { %v1000_v61 = vsub.f32 %v844_v39, %v990_v60 }
 0x491   : > { %v1004_v62 = vmul.f32 1.442695, %v1000_v61 }
 0x492   : > { %v993_v63 = vpop.xlane.xlu1 %992  ;;  %v630_v37 = vpop.permute.xlu0 %629 }
 0x493   : > { %v1001_v0 = vsub.f32 %v890_v45, %v993_v63  ;;  %2011 = vpow2.f32 %v1004_v62 }
 0x495   : > { %v1006_v1 = vmul.f32 1.442695, %v1001_v0 }
 0x496   : > { %v632_v3 = vpop.permute.xlu0 %631 }
 0x497   : > { %2013 = vpow2.f32 %v1006_v1 }
 0x49d   : > { %v2334_v19 = vpop.eup %2011 }
 0x49e   : > { %v1012_v2 = vsel %vm802_vm4, %v2334_v19, 0.0 }
 0x4a1   : > { %v2336_v32 = vpop.eup %2013 }
 0x4a2   : > { %v1015_v31 = vsel %vm802_vm4, %v2336_v32, 0.0 }
 0x4a3   : > { %1016 = vadd.xlane.f32.xlu1 %v1015_v31 }
 0x4a4   : > { %1013 = vadd.xlane.f32.xlu0 %v1012_v2 }
 0x4c7   : > { %v996_v4 = vpop.xlane.xlu0 %995 }
 0x4c8   : > { %v1002_v5 = vsub.f32 %v936_v50, %v996_v4 }
 0x4ca   : > { %v1008_v6 = vmul.f32 1.442695, %v1002_v5 }
 0x4cb   : > { %v634_v10 = vpop.permute.xlu0 %633 }
 0x4cc   : > { %2015 = vpow2.f32 %v1008_v6  ;;  %v641_v13 = vcombine.low %v630_v37, %v634_v10  ;;  %v642_v14 = vcombine.high %v630_v37, %v634_v10 }
 0x4ce   : > { %v649_v20 = vrot.slane %v641_v13, %v2268_v34  ;;  %v656_v21 = vrot.slane %v642_v14, %v2268_v34 }
 0x4d6   : > { %v2342_v7 = vpop.eup %2015 }
 0x4d7   : > { %v1018_v8 = vsel %vm802_vm4, %v2342_v7, 0.0 }
 0x4d8   : > { %1019 = vadd.xlane.f32.xlu1 %v1018_v8 }
 0x4fc   : > { %v999_v11 = vpop.xlane.xlu0 %998 }
 0x4fd   : > { %v1003_v12 = vsub.f32 %v982_v54, %v999_v11 }
 0x4ff   : > { %v1010_v15 = vmul.f32 1.442695, %v1003_v12 }
 0x500   : > { %v636_v16 = vpop.permute.xlu0 %635 }
 0x501   : > { %2017 = vpow2.f32 %v1010_v15  ;;  %v657_v17 = vcombine.low %v632_v3, %v636_v16  ;;  %v658_v18 = vcombine.high %v632_v3, %v636_v16  ;;  %v1236_v15 = vld [vmem:[%s2537_s3] sm:$0xf] }
 0x502   : > { %v1241_v16 = vsel %vm806_vm3, %v1236_v15, 0  ;;  %v1755_v15 = vld [vmem:[%s2540_s6] ss:$0 sm:$0xff] }
 0x503   : > { %v665_v22 = vrot.slane %v657_v17, %v2268_v34  ;;  %v672_v23 = vrot.slane %v658_v18, %v2268_v34 }
 0x505   : > { %v673_v24 = vcombine.low %v649_v20, %v665_v22  ;;  %v674_v25 = vcombine.high %v649_v20, %v665_v22  ;;  %v689_v26 = vcombine.low %v656_v21, %v672_v23  ;;  %v690_v27 = vcombine.high %v656_v21, %v672_v23  ;;  %v1749_v21 = vld [vmem:[%s2537_s3 + $0x4] sm:$0xf] }
 0x507   : > { %v681_v28 = vrot.slane %v673_v24, %v2280_v40  ;;  %v688_v29 = vrot.slane %v674_v25, %v2280_v40  ;;  %v697_v30 = vrot.slane %v689_v26, %v2280_v40  ;;  %v704_v33 = vrot.slane %v690_v27, %v2280_v40 }
 0x509   : > { %v709_v35 = vcombine.low %v681_v28, %v688_v29  ;;  %v1737_v36 = vcombine.high %v681_v28, %v688_v29  ;;  %v725_v38 = vcombine.low %v697_v30, %v704_v33  ;;  %v1738_v39 = vcombine.high %v697_v30, %v704_v33 }
 0x50a   : > { %v1290_v28 = vsel %vm806_vm3, %v1749_v21, 0 }
 0x50b   : > { %v2354_v41 = vpop.eup %2017  ;;  %v716_v42 = vrot.slane %v709_v35, %v2268_v34  ;;  %v724_v43 = vrot.slane %v1737_v36, %v2268_v34  ;;  %v732_v44 = vrot.slane %v725_v38, %v2268_v34  ;;  %v740_v45 = vrot.slane %v1738_v39, %v2268_v34  ;;  %v1751_v35 = vld [vmem:[%s2537_s3 + $0x8] sm:$0xf]  ;;  %v1753_v39 = vld [vmem:[%s2537_s3 + $0xc] sm:$0xf] }
 0x50c   : > { %v1021_v46 = vsel %vm802_vm4, %v2354_v41, 0.0  ;;  %v1339_v38 = vsel %vm806_vm3, %v1751_v35, 0 }
 0x50d   : > { %v741_v47 = vcombine.low %v716_v42, %v724_v43  ;;  %v742_v48 = vcombine.high %v716_v42, %v724_v43  ;;  %v757_v49 = vcombine.low %v732_v44, %v740_v45  ;;  %v758_v50 = vcombine.high %v732_v44, %v740_v45  ;;  %1022 = vadd.xlane.f32.xlu1 %v1021_v46 }
 0x50e   : > { %v1388_v44 = vsel %vm806_vm3, %v1753_v39, 0 }
 0x50f   : > { %v749_v51 = vrot.slane %v741_v47, %v2280_v40  ;;  %v756_v52 = vrot.slane %v742_v48, %v2280_v40  ;;  %v765_v53 = vrot.slane %v757_v49, %v2280_v40  ;;  %v772_v54 = vrot.slane %v758_v50, %v2280_v40 }
 0x511   : > { %v773_v55 = vcombine.low %v749_v51, %v765_v53  ;;  %v774_v56 = vcombine.high %v749_v51, %v765_v53  ;;  %v775_v57 = vcombine.low %v756_v52, %v772_v54  ;;  %v776_v34 = vcombine.high %v756_v52, %v772_v54  ;;  %v790_v52 = vld [vmem:[%s2233_s27] sm:$0xf]  ;;  %s335_s27 = sand.u32 1, %s2095_s10  }
 0x512   : > { %v791_v53 = vunpack.c.l.bf16 %v790_v52  ;;  %v1747_v54 = vld [vmem:[%s2538_s4] ss:$0 sm:$0xff]  ;;  %s1729_s29 = sshll.u32 %s335_s27, 2  ;;  %s1638_s28 = scalar_lea.sflag [#allocation6], %s335_s27 }
 0x513   : > { %v777_v58 = vpack.c.bf16 %v773_v55, %v773_v55  ;;  %v778_v59 = vpack.c.bf16 %v774_v56, %v774_v56  ;;  %v779_v60 = vpack.c.bf16 %v775_v57, %v775_v57  ;;  %v780_v61 = vpack.c.bf16 %v776_v34, %v776_v34  ;;  %s337_s20 = scalar_lea.vmem [#allocation5], %s1729_s29  ;;  %s2122_s29 = smov [#allocation5]  }
 0x514   : > { %v1235_v55 = vadd.f32 %v1747_v54, %v791_v53  ;;  %s1652_s23 = sshll.u32 %s337_s20, 4  ;;  %s2037_s15 = sshll.u32 %s2122_s29, 4  ;;  %s2489_s23 = int_to_ptr.vmem [resolvable:$true] %s1652_s23  ;;  %s2038_s15 = int_to_ptr.vmem [resolvable:$false] %s2037_s15 }
 0x515   : > { %781 = vst.msk [vmem:[#allocation4] sm:$0xf] %vm581_vm2, %v777_v58  ;;  %782 = vst.msk [vmem:[#allocation4 + $0x4] sm:$0xf] %vm581_vm2, %v778_v59  ;;  %s2033_s12 = scalar_lea.vmem %s2489_s23, 64  ;;  %s2039_s16 = scalar_lea.vmem %s2038_s15, 128 }
 0x516   : > { %783 = vst.msk [vmem:[#allocation4 + $0x8] sm:$0xf] %vm581_vm2, %v779_v60  ;;  %784 = vst.msk [vmem:[#allocation4 + $0xc] sm:$0xf] %vm581_vm2, %v780_v61  ;;  %p2034_p12 = scmp.ne.s32.totalorder %s2489_s23, %s2033_s12  ;;  %p2040_p1 = scmp.lt.s32.totalorder %s2489_s23, %s2038_s15 }
 0x517   : > { %p2041_p2 = scmp.lt.s32.totalorder %s2039_s16, %s2033_s12 }
 0x518   : > { %p2035_p13 = pnand %p2034_p12, %p2213_p4 }
 0x519   : > { %p2042_p3 = por %p2041_p2, %p2040_p1 }
 0x51a   : > { %p2036_p0 = pneg %p2035_p13 }
 0x51c   : > { %v1036_v62 = vld [vmem:[#allocation4] sm:$0xf]  ;;  %v1037_v63 = vld [vmem:[#allocation4 + $0x4] sm:$0xf]  ;;  %p2043_p5 = pnand %p2042_p3, %p2036_p0 }
 0x51d   : > { %v1044_v40 = vsel %vm806_vm3, %v1036_v62, 0  ;;  %v1090_v0 = vsel %vm806_vm3, %v1037_v63, 0  ;;  %v1039_v5 = vld [vmem:[#allocation4 + $0xc] sm:$0xf]  ;;  %v1038_v8 = vld [vmem:[#allocation4 + $0x8] sm:$0xf] }
 0x51e   : > { %1845 = vmatpush3.bf16.msra.mxu0 %v1044_v40  ;;  %1851 = vmatpush3.bf16.msra.mxu1 %v1090_v0  ;;  %v1182_v11 = vsel %vm806_vm3, %v1039_v5, 0  ;;  %v1136_v12 = vsel %vm806_vm3, %v1038_v8, 0  ;;  %v2001_v8 = vld [vmem:[%s2541_s7] sm:$0xff]  }
 0x51f   : > { %1862 = vmatprep.subr.bf16.mxu1 %v2113_v9  ;;  %1856 = vmatprep.subr.bf16.mxu0 %v2113_v9 }
 0x530   : > { %v1017_v1 = vpop.xlane.xlu1 %1016 }
 0x531   : > { %2019 = vrcp.f32 %v1017_v1  ;;  %v1014_v31 = vpop.xlane.xlu0 %1013  ;;  %v1999_v1 = vld [vmem:[%s2539_s5] sm:$0xff]  }
 0x532   : > { %2021 = vrcp.f32 %v1014_v31  ;;  %v2000_v31 = vld [vmem:[%s2539_s5 + $0x8] sm:$0xff]  }
 0x53b   : > { %v2020_v2 = vpop.eup %2019 }
 0x53c   : > { %v2022_v37 = vpop.eup %2021  ;;  %v1029_v3 = vmul.f32 %v2020_v2, %v2336_v32 }
 0x53d   : > { %v1028_v4 = vmul.f32 %v2022_v37, %v2334_v19 }
 0x53e   : > { %v1033_v6 = vpack.c.bf16 %v1029_v3, %v1029_v3 }
 0x53f   : > { %v1032_v10 = vpack.c.bf16 %v1028_v4, %v1028_v4 }
 0x540   : > { %1853 = vmatmul.mubr.msk.bf16.vlgmr.msra.gmra.mrb[8].mxu1 %vm802_vm4, %v1033_v6 }
 0x541   : > { %1863 = vmatpush3.bf16.msra.mxu1 %v1182_v11  ;;  %1847 = vmatmul.mubr.msk.bf16.vlgmr.msra.gmra.mrb[12].mxu0 %vm802_vm4, %v1032_v10  ;;  %v2002_v10 = vld [vmem:[%s2541_s7 + $0x8] sm:$0xff]   ;;  %v2003_v11 = vld [vmem:[%s2541_s7 + $0x10] sm:$0xff]  }
 0x542   : > { %1857 = vmatpush3.bf16.msra.mxu0 %v1136_v12  ;;  %1858 = vmatprep.mubr.msk.bf16.mxu0 %vm2114_vm1, %v2113_v9  ;;  %v2004_v12 = vld [vmem:[%s2541_s7 + $0x18] sm:$0xff]  }
 0x543   : > { %1864 = vmatprep.mubr.msk.bf16.mxu1 %vm2114_vm1, %v2113_v9  ;;  %1868 = vmatprep.subr.bf16.mxu0 %v2113_v9 }
 0x544   : > { %1892 = vmatprep.subr.bf16.mxu1 %v2113_v9 }
 0x565   : > { %v1020_v19 = vpop.xlane.xlu1 %1019 }
 0x566   : > { %2023 = vrcp.f32 %v1020_v19  ;;  %v2005_v19 = vld [vmem:[%s2541_s7 + $0x20] sm:$0xff]  }
 0x570   : > { %v2024_v32 = vpop.eup %2023 }
 0x571   : > { %v1030_v13 = vmul.f32 %v2024_v32, %v2342_v7  ;;  %v2006_v32 = vld [vmem:[%s2541_s7 + $0x28] sm:$0xff]  }
 0x573   : > { %v1034_v14 = vpack.c.bf16 %v1030_v13, %v1030_v13  ;;  %v2007_v13 = vld [vmem:[%s2541_s7 + $0x30] sm:$0xff]  }
 0x575   : > { %1859 = vmatmul.mubr.msk.bf16.vlgmr.msra.gmra.mrb[16].mxu0 %vm802_vm4, %v1034_v14  ;;  %v2008_v14 = vld [vmem:[%s2541_s7 + $0x38] sm:$0xff]  }
 0x576   : > { %1870 = vmatprep.mubr.msk.bf16.mxu0 %vm2114_vm1, %v2113_v9  ;;  %1869 = vmatpush3.bf16.msra.mxu0 %v1241_v16 }
 0x577   : > { %1874 = vmatprep.subr.bf16.mxu0 %v2113_v9 }
 0x59a   : > { %v1023_v17 = vpop.xlane.xlu1 %1022 }
 0x59b   : > { %2025 = vrcp.f32 %v1023_v17 }
 0x5a5   : > { %v2026_v18 = vpop.eup %2025 }
 0x5a6   : > { %v1031_v7 = vmul.f32 %v2026_v18, %v2354_v41 }
 0x5a8   : > { %v1035_v20 = vpack.c.bf16 %v1031_v7, %v1031_v7 }
 0x5aa   : > { %1865 = vmatmul.mubr.msk.bf16.vlgmr.msra.gmra.mrb[12].mxu1 %vm802_vm4, %v1035_v20 }
 0x5ab   : > { %1896 = vmatprep.mubr.msk.bf16.mxu1 %vm2114_vm1, %v2113_v9  ;;  %1893 = vmatpush3.bf16.msra.mxu1 %v1999_v1 }
 0x5ac   : > { %1894 = vmatprep.subr.bf16.mxu1 %v2113_v9 }
 0x5af   : > { %1895 = vmatpush3.bf16.msra.mxu1 %v2000_v31 }
 0x5b0   : > { %1900 = vmatprep.subr.bf16.mxu1 %v2113_v9 }
 0x613   : > { %v1126_v22 = vpop.f32.mrb[8].mxu1 }
 0x614   : > { %v1080_v23 = vpop.f32.mrb[12].mxu0  ;;  %v1854_v24 = vpop.f32.mrb[9].mxu1  ;;  %v1225_v36 = vpack.c.bf16 %v1126_v22, %v1126_v22 }
 0x615   : > { %v1224_v25 = vpack.c.bf16 %v1080_v23, %v1080_v23  ;;  %v1848_v26 = vpop.f32.mrb[13].mxu0  ;;  %v1129_v27 = vpop.f32.mrb[10].mxu1 }
 0x616   : > { %v1083_v29 = vpop.f32.mrb[14].mxu0  ;;  %v1855_v30 = vpop.f32.mrb[11].mxu1  ;;  %v1760_v27 = vld [vmem:[%s2542_s8] ss:$0 sm:$0xff] }
 0x617   : > { %v1849_v33 = vpop.f32.mrb[15].mxu0  ;;  %1871 = vmatmul.mubr.msk.bf16.vlgmr.msra.gmra.mrb[20].mxu0 %vm802_vm4, %v1224_v25 }
 0x618   : > { %1875 = vmatpush3.bf16.msra.mxu0 %v1290_v28  ;;  %1876 = vmatprep.mubr.msk.bf16.mxu0 %vm2114_vm1, %v2113_v9 }
 0x619   : > { %1880 = vmatprep.subr.bf16.mxu0 %v2113_v9 }
 0x623   : > { %1877 = vmatmul.mubr.msk.bf16.vlgmr.msra.gmra.mrb[20].mxu0 %vm802_vm4, %v1225_v36 }
 0x624   : > { %1881 = vmatpush3.bf16.msra.mxu0 %v1339_v38  ;;  %1882 = vmatprep.mubr.msk.bf16.mxu0 %vm2114_vm1, %v2113_v9 }
 0x625   : > { %1886 = vmatprep.subr.bf16.mxu0 %v2113_v9 }
 0x648   : > { %v1172_v41 = vpop.f32.mrb[16].mxu0 }
 0x649   : > { %v1226_v42 = vpack.c.bf16 %v1172_v41, %v1172_v41  ;;  %v1860_v43 = vpop.f32.mrb[17].mxu0 }
 0x64a   : > { %v1175_v45 = vpop.f32.mrb[18].mxu0 }
 0x64b   : > { %v1861_v46 = vpop.f32.mrb[19].mxu0  ;;  %1883 = vmatmul.mubr.msk.bf16.vlgmr.msra.gmra.mrb[20].mxu0 %vm802_vm4, %v1226_v42 }
 0x64c   : > { %1887 = vmatpush3.bf16.msra.mxu0 %v1388_v44  ;;  %1888 = vmatprep.mubr.msk.bf16.mxu0 %vm2114_vm1, %v2113_v9 }
 0x67d   : > { %v1218_v47 = vpop.f32.mrb[12].mxu1 }
 0x67e   : > { %v1227_v48 = vpack.c.bf16 %v1218_v47, %v1218_v47  ;;  %v1866_v49 = vpop.f32.mrb[13].mxu1 }
 0x67f   : > { %v1221_v50 = vpop.f32.mrb[14].mxu1 }
 0x680   : > { %v1867_v51 = vpop.f32.mrb[15].mxu1  ;;  %1889 = vmatmul.mubr.msk.bf16.vlgmr.msra.gmra.mrb[20].mxu0 %vm802_vm4, %v1227_v48 }
 0x753   : > { %v1424_v56 = vpop.f32.mrb[20].mxu0 }
 0x754   : > { %v2427_v57 = vadd.f32 %v1424_v56, %v1235_v55  ;;  %v1890_v34 = vpop.f32.mrb[21].mxu0 }
 0x755   : > { %v1427_v58 = vpop.f32.mrb[22].mxu0 }
 0x756   : > { %v1891_v59 = vpop.f32.mrb[23].mxu0  ;;  %v1432_v60 = vsel %vm349_vm0, %v2427_v57, 0.0 }
 0x757   : > { %1433 = vadd.xlane.f32.xlu1 %v1432_v60 }
 0x7e4   : > { %v1434_v61 = vpop.xlane.xlu1 %1433 }
 0x7e5   : > { %v1436_v62 = vmul.f32 0.03125, %v1434_v61 }
 0x7e7   : > { %v1437_v63 = vsub.f32 %v2427_v57, %v1436_v62 }
 0x7e9   : > { %v1438_v40 = vmul.f32 %v1437_v63, %v1437_v63 }
 0x7eb   : > { %v1439_v0 = vsel %vm349_vm0, %v1438_v40, 0.0 }
 0x7ec   : > { %1440 = vadd.xlane.f32.xlu1 %v1439_v0 }
 0x879   : > { %v1441_v2 = vpop.xlane.xlu1 %1440 }
 0x87a   : > { %v1442_v37 = vmul.f32 0.03125, %v1441_v2 }
 0x87c   : > { %v1443_v3 = vadd.f32 1e-05, %v1442_v37 }
 0x87e   : > { %2027 = vrsqrt.f32 %v1443_v3 }
 0x888   : > { %v2028_v4 = vpop.eup %2027 }
 0x889   : > { %v1445_v5 = vmul.f32 %v2028_v4, %v1437_v63 }
 0x88b   : > { %v1446_v6 = vpack.c.bf16 %v1445_v5, %v1445_v5 }
 0x88d   : > { %1897 = vmatmul.mubr.msk.bf16.vlgmr.msra.gmra.mrb[16].mxu1 %vm349_vm0, %v1446_v6 }
 0x88e   : > { %1916 = vmatprep.mubr.msk.bf16.mxu1 %vm2114_vm1, %v2113_v9  ;;  %1901 = vmatpush3.bf16.msra.mxu1 %v2001_v8 }
 0x88f   : > { %1902 = vmatprep.subr.bf16.mxu1 %v2113_v9 }
 0x892   : > { %1903 = vmatpush3.bf16.msra.mxu1 %v2002_v10 }
 0x893   : > { %1904 = vmatprep.subr.bf16.mxu1 %v2113_v9 }
 0x896   : > { %1905 = vmatpush3.bf16.msra.mxu1 %v2003_v11 }
 0x897   : > { %1906 = vmatprep.subr.bf16.mxu1 %v2113_v9 }
 0x89a   : > { %1907 = vmatpush3.bf16.msra.mxu1 %v2004_v12 }
 0x89b   : > { %1908 = vmatprep.subr.bf16.mxu1 %v2113_v9 }
 0x89e   : > { %1909 = vmatpush3.bf16.msra.mxu1 %v2005_v19 }
 0x89f   : > { %1910 = vmatprep.subr.bf16.mxu1 %v2113_v9 }
 0x8a2   : > { %1911 = vmatpush3.bf16.msra.mxu1 %v2006_v32 }
 0x8a3   : > { %1912 = vmatprep.subr.bf16.mxu1 %v2113_v9 }
 0x8a6   : > { %1913 = vmatpush3.bf16.msra.mxu1 %v2007_v13 }
 0x8a7   : > { %1914 = vmatprep.subr.bf16.mxu1 %v2113_v9 }
 0x8aa   : > { %1915 = vmatpush3.bf16.msra.mxu1 %v2008_v14 }
 0x960   : > { %v1507_v16 = vpop.f32.mrb[16].mxu1 }
 0x961   : > { %v1508_v17 = vadd.f32 %v1755_v15, %v1507_v16  ;;  %v1898_v18 = vpop.f32.mrb[17].mxu1 }
 0x962   : > { %v1510_v7 = vpop.f32.mrb[18].mxu1 }
 0x963   : > { %v1759_v20 = vmul.f32 -1.702, %v1508_v17  ;;  %v1899_v21 = vpop.f32.mrb[19].mxu1 }
 0x965   : > { %v1515_v22 = vmul.f32 1.442695, %v1759_v20 }
 0x967   : > { %2029 = vpow2.f32 %v1515_v22 }
 0x971   : > { %v2030_v9 = vpop.eup %2029 }
 0x972   : > { %v1517_v23 = vadd.f32 1.0, %v2030_v9 }
 0x974   : > { %2031 = vrcp.f32 %v1517_v23 }
 0x97e   : > { %v2032_v24 = vpop.eup %2031 }
 0x97f   : > { %v1520_v25 = vmul.f32 %v2032_v24, %v1508_v17 }
 0x981   : > { %v1521_v26 = vpack.c.bf16 %v1520_v25, %v1520_v25 }
 0x983   : > { %1917 = vmatmul.mubr.bf16.vlgmr.msra.gmra.mrb[20].mxu1 %v1521_v26 }
 0xa56   : > { %v1627_v28 = vpop.f32.mrb[20].mxu1 }
 0xa57   : > { %v1628_v29 = vadd.f32 %v1760_v27, %v1627_v28  ;;  %v1918_v30 = vpop.f32.mrb[21].mxu1 }
 0xa58   : > { %v1630_v33 = vpop.f32.mrb[22].mxu1 }
 0xa59   : > { %v1633_v35 = vadd.f32 %v2427_v57, %v1628_v29  ;;  %v1919_v36 = vpop.f32.mrb[23].mxu1 }
 0xa5b   : > { %v1634_v38 = vpack.c.bf16 %v1633_v35, %v1633_v35 }
 0xa5d   : > { %1636 = vst.msk [vmem:[%s337_s20] sm:$0xf] %vm1635_vm5, %v1634_v38 }
 0xa5e   : > { %2046 = shalt.err (!%p2043_p5)
}
 0xa5f   : > { %s2047_s27 = scalar_lea.hbm %s2487_s26, 64  ;;  %s2051_s24 = scalar_lea.hbm %s2543_s9, 128 }
 0xa60   : > { %p2048_p6 = scmp.ne.s32.totalorder %s2487_s26, %s2047_s27  ;;  %p2052_p10 = scmp.lt.u32.totalorder %s2487_s26, %s2543_s9 }
 0xa61   : > { %p2053_p11 = scmp.lt.u32.totalorder %s2051_s24, %s2047_s27  ;;  %p2055_p13 = scmp.lt.u32.totalorder %s2047_s27, %s2487_s26 }
 0xa62   : > { %p2049_p7 = pnand %p2048_p6, %p2213_p4 }
 0xa63   : > { %p2054_p12 = por %p2053_p11, %p2052_p10 }
 0xa64   : > { %p2050_p9 = pneg %p2049_p7 }
 0xa65   : > { %p2056_p0 = por %p2055_p13, %p2054_p12 }
 0xa67   : > { %p2057_p1 = pnand %p2056_p0, %p2050_p9 }
 0xa69   : > { %2060 = shalt.err (!%p2057_p1)
}
 0xa6a   : > { %1933 = dma.vmem_to_hbm [thread:$0]  (%p2213_p4), %s2489_s23, 64, %s2487_s26, %s1638_s28  }
 0xa6b PF: > { %p1939_p2 = scmp.ge.s32.totalorder %s2111_s14, 2  ;;  %s1664_s12 = sand.u32 1, %s2091_s30  }
 0xa6c   : > { %s1665_s15 = scalar_lea.sflag [#allocation6], %s1664_s12 }
 0xa6d   : > { %p1936_p3 = pnand %p1939_p2, %p2220_p8 }
 0xa6f   : > { %2086 = dma.done.wait (!%p1936_p3), %s1665_s15, 64  }
 0xa70   : > { %2088 = vsyncadd (!%p1936_p3), %s1665_s15, 4294967232  ;;  %s22_s14 = sadd.s32 1, %s2111_s14   ;;  %s2546_s30 = smov %s2095_s10 }
 0xa71   : > { %p19_p5 = scmp.ge.s32.totalorder %s22_s14, 4   ;;  %s2547_s10 = smov %s2099_s11 }
 0xa72   : > { %s2548_s11 = smov %s2226_s22  ;;  %s2549_s12 = smov %s2107_s13 }
 0xa73   : > { %s2550_s13 = smov %s2552_s17  ;;  %21 = sbr.rel (!%p19_p5) target bundleno = 4 (0x4), region = 100 }
 0xa7a   :  { %1670 = vsyncpa [#allocation6], 1 }
 0xa7b   :  { %1672 = vsyncpa [#allocation6 + $0x1], 1 }

</bundles_post_ra>
